<compile_context>
chip_gen: v7x
topology: tpu7x:2x2x1
jax: 0.10.0
libtpu: 0.0.40
codegen_flags: <defaults>
</compile_context>

<pallas_src>
import functools
import math

import jax
import jax.numpy as jnp
from jax.experimental import pallas as pl
from jax.experimental.pallas import tpu as pltpu

D_MODEL = 256
HEADS = 8


def _mha_kernel(*refs, heads, fuse_qkv):
    if fuse_qkv:
        x_ref, maskb_ref, wqkv_ref, bqkv_ref, wo_ref, bo_ref, o_ref = refs
        q_ref = x_ref
        sk = x_ref.shape[1]
    else:
        (q_ref, k_ref, v_ref, maskb_ref,
         wqkv_ref, bqkv_ref, wo_ref, bo_ref, o_ref) = refs
        sk = k_ref.shape[1]

    bb, bq, d = q_ref.shape
    d_k = d // heads
    scale = 1.0 / math.sqrt(d_k)
    cdt = wqkv_ref.dtype                    # MXU operand dtype (bf16 or f32), set by caller

    # ---- Q/K/V projections (f32 accumulation) ------------------------------------
    if fuse_qkv:
        # Self-attention with block_q == Sq: one wide MXU pass, N = 3*D.
        x2d = x_ref[...].reshape(bb * bq, d).astype(cdt)
        qkv = jnp.dot(x2d, wqkv_ref[...],
                      preferred_element_type=jnp.float32) + bqkv_ref[...]
        q_p = qkv[:, 0:d] * scale           # fold 1/sqrt(d_k) into q (M x D, not M x Sk)
        k_p = qkv[:, d:2 * d]
        v_p = qkv[:, 2 * d:3 * d]
    else:
        q2d = q_ref[...].reshape(bb * bq, d).astype(cdt)
        k2d = k_ref[...].reshape(bb * sk, d).astype(cdt)
        v2d = v_ref[...].reshape(bb * sk, d).astype(cdt)
        q_p = (jnp.dot(q2d, wqkv_ref[:, 0:d],
                       preferred_element_type=jnp.float32) + bqkv_ref[:, 0:d]) * scale
        k_p = jnp.dot(k2d, wqkv_ref[:, d:2 * d],
                      preferred_element_type=jnp.float32) + bqkv_ref[:, d:2 * d]
        v_p = jnp.dot(v2d, wqkv_ref[:, 2 * d:3 * d],
                      preferred_element_type=jnp.float32) + bqkv_ref[:, 2 * d:3 * d]

    # ---- head split: single relayout per tensor -> (B*H, S, d_k) -------------------
    q3 = jnp.swapaxes(q_p.reshape(bb, bq, heads, d_k), 1, 2).reshape(bb * heads, bq, d_k)
    k3 = jnp.swapaxes(k_p.reshape(bb, sk, heads, d_k), 1, 2).reshape(bb * heads, sk, d_k)
    v3 = jnp.swapaxes(v_p.reshape(bb, sk, heads, d_k), 1, 2).reshape(bb * heads, sk, d_k)

    # ---- scores (scale already folded into q) + additive mask bias -----------------
    scores = jnp.einsum('bqd,bkd->bqk', q3.astype(cdt), k3.astype(cdt),
                        preferred_element_type=jnp.float32)
    scores = scores.reshape(bb, heads, bq, sk) + maskb_ref[...][:, None, :, :]

    # ---- f32 softmax over keys, 1/rowsum on the EUP ---------------------------------
    m = jnp.max(scores, axis=-1, keepdims=True)
    p = jnp.exp(scores - m)
    p = p * pl.reciprocal(jnp.sum(p, axis=-1, keepdims=True), approx=True)
    p3 = p.reshape(bb * heads, bq, sk).astype(cdt)

    # ---- attention output (B*H, bq, d_k) --------------------------------------------
    attn = jnp.einsum('bqk,bkd->bqd', p3, v3.astype(cdt),
                      preferred_element_type=jnp.float32)
    attn4 = attn.reshape(bb, heads, bq, d_k)

    # ---- output projection: head-concat folded into Wo (per-head accumulation) ------
    # Avoids the swapaxes + 256-lane re-pack relayout; d_k=32 contraction inefficiency
    # on the MXU is accepted (review), relayout/VMEM-store traffic is what we save.
    out = jnp.zeros((bb * bq, d), jnp.float32)
    for h in range(heads):                                  # static unroll, heads == 8
        a_h = attn4[:, h].reshape(bb * bq, d_k).astype(cdt)
        out = out + jnp.dot(a_h, wo_ref[h * d_k:(h + 1) * d_k, :],
                            preferred_element_type=jnp.float32)
    out = out + bo_ref[...]
    o_ref[...] = out.reshape(bb, bq, d).astype(o_ref.dtype)


def _vmem_budget_bytes(block_b, block_q, sk, d, heads, act_bytes, w_bytes, out_bytes,
                       fuse_qkv):
    """Rough per-step VMEM budget: double-buffered blocks + weights + live values."""
    blk_in = block_b * block_q * d * act_bytes
    if not fuse_qkv:
        blk_in += 2 * block_b * sk * d * act_bytes
    blk_out = block_b * block_q * d * out_bytes
    blk_mask = block_b * sk * 4
    weights = (3 * d * d + d * d) * w_bytes + (3 * d + d) * 4
    live = (2 * block_b * heads * block_q * sk * 4                       # scores + p (f32)
            + 3 * (block_b * block_q * d + 2 * block_b * sk * d) * 4)    # proj + head-split
    return 2 * (blk_in + blk_out + blk_mask + weights) + live


def multi_head_attention(q, k, v, wqkv, bqkv, wo, bo, mask=None, *,
                         heads=HEADS, block_b=None, block_q=None, out_dtype=None):
    """Pallas MultiHeadAttention forward.

    q: (B, Sq, D); k, v: (B, Sk, D); mask: (B, 1, Sk) int (0 = masked key) or None.
    wqkv: (D, 3D) = [Wq | Wk | Wv] stored [in, out]; bqkv: (1, 3D) f32;
    wo: (D, D); bo: (1, D) f32.  Pass wqkv/wo already in the desired MXU dtype
    (bf16 recommended on v6e/v7x) -- the kernel uses them as stored.
    """
    B, Sq, D = q.shape
    Sk = k.shape[1]
    assert k.shape == v.shape and k.shape[0] == B and k.shape[2] == D
    assert D % heads == 0
    assert wqkv.shape == (D, 3 * D) and wo.shape == (D, D)
    assert wqkv.dtype == wo.dtype, "Wqkv and Wo must share the MXU compute dtype"

    if out_dtype is None:
        out_dtype = q.dtype
    if block_b is None:
        # Keep >= 2 grid steps when possible: v7x megacore sharding + pipeline buffering.
        block_b = B // 2 if (B % 2 == 0 and B >= 2) else B
    if block_q is None:
        block_q = Sq
    assert B % block_b == 0
    assert Sq % block_q == 0 and (block_q == Sq or block_q % 8 == 0)

    # Additive mask bias precomputed once outside the kernel (0 / -1e9, f32).
    if mask is None:
        mask_bias = jnp.zeros((B, 1, Sk), jnp.float32)
    else:
        mask_bias = jnp.where(mask == 0, -1e9, 0.0).astype(jnp.float32).reshape(B, 1, Sk)

    # Fused single x @ Wqkv matmul only when q/k/v are the same array and the query
    # axis is untiled (otherwise the general path streams q tiles against full K/V).
    fuse_qkv = (q is k) and (k is v) and (block_q == Sq)

    grid = (B // block_b, Sq // block_q)

    if fuse_qkv:
        x_specs = [pl.BlockSpec((block_b, block_q, D), lambda i, j: (i, j, 0))]
        inputs = (q,)
    else:
        x_specs = [pl.BlockSpec((block_b, block_q, D), lambda i, j: (i, j, 0)),
                   pl.BlockSpec((block_b, Sk, D), lambda i, j: (i, 0, 0)),
                   pl.BlockSpec((block_b, Sk, D), lambda i, j: (i, 0, 0))]
        inputs = (q, k, v)

    in_specs = x_specs + [
        pl.BlockSpec((block_b, 1, Sk), lambda i, j: (i, 0, 0)),
        pl.BlockSpec(wqkv.shape, lambda i, j: (0, 0)),
        pl.BlockSpec(bqkv.shape, lambda i, j: (0, 0)),
        pl.BlockSpec(wo.shape, lambda i, j: (0, 0)),
        pl.BlockSpec(bo.shape, lambda i, j: (0, 0)),
    ]

    est = _vmem_budget_bytes(block_b, block_q, Sk, D, heads,
                             jnp.dtype(q.dtype).itemsize,
                             jnp.dtype(wqkv.dtype).itemsize,
                             jnp.dtype(out_dtype).itemsize,
                             fuse_qkv)
    vmem_limit = int(min(96 * 1024 * 1024, max(32 * 1024 * 1024, 2 * est)))

    kernel = functools.partial(_mha_kernel, heads=heads, fuse_qkv=fuse_qkv)

    return pl.pallas_call(
        kernel,
        out_shape=jax.ShapeDtypeStruct((B, Sq, D), out_dtype),
        grid=grid,
        in_specs=in_specs,
        out_specs=pl.BlockSpec((block_b, block_q, D), lambda i, j: (i, j, 0)),
        compiler_params=pltpu.CompilerParams(
            dimension_semantics=("parallel", "parallel"),
            vmem_limit_bytes=vmem_limit),
    )(*inputs, mask_bias, wqkv, bqkv, wo, bo)


def mha_reference(q, k, v, wqkv, bqkv, wo, bo, mask=None, heads=HEADS):
    """Pure-JAX reference mirroring the PyTorch module (eval mode)."""
    B, Sq, D = q.shape
    Sk = k.shape[1]
    d_k = D // heads
    q_p = q @ wqkv[:, 0:D] + bqkv[:, 0:D]
    k_p = k @ wqkv[:, D:2 * D] + bqkv[:, D:2 * D]
    v_p = v @ wqkv[:, 2 * D:3 * D] + bqkv[:, 2 * D:3 * D]

    def split(x, s):
        return x.reshape(B, s, heads, d_k).transpose(0, 2, 1, 3)

    qh, kh, vh = split(q_p, Sq), split(k_p, Sk), split(v_p, Sk)
    scores = jnp.einsum('bhqd,bhkd->bhqk', qh, kh) / math.sqrt(d_k)
    if mask is not None:
        scores = jnp.where(mask[:, None, :, :] == 0, -1e9, scores)
    p = jax.nn.softmax(scores, axis=-1)
    attn = jnp.einsum('bhqk,bhkd->bhqd', p, vh)
    concat = attn.transpose(0, 2, 1, 3).reshape(B, Sq, D)
    return concat @ wo + bo


if __name__ == "__main__":
    key = jax.random.PRNGKey(0)
    kx, kw, kb, kwo, kbo, kkv, kx2 = jax.random.split(key, 7)

    B, S, D = 2, 8, D_MODEL
    x = jax.random.normal(kx, (B, S, D), jnp.float32)

    # f32 master weights (used by the reference) ...
    wqkv32 = jax.random.normal(kw, (D, 3 * D), jnp.float32) * 0.02
    bqkv = jax.random.normal(kb, (1, 3 * D), jnp.float32) * 0.02
    wo32 = jax.random.normal(kwo, (D, D), jnp.float32) * 0.02
    bo = jax.random.normal(kbo, (1, D), jnp.float32) * 0.02
    # ... and bf16 storage copies for the kernel (halved weight DMA / VMEM; in a real
    # model these are the stored parameter dtype, cast once at init, not per call).
    wqkv16 = wqkv32.astype(jnp.bfloat16)
    wo16 = wo32.astype(jnp.bfloat16)

    mask = jnp.ones((B, 1, S), jnp.int32).at[0, 0, -1].set(0)   # exercise masking path

    # 1) Self-attention, fused QKV path, bf16 weights, f32 output, grid (2, 1).
    out = jax.block_until_ready(
        multi_head_attention(x, x, x, wqkv16, bqkv, wo16, bo, mask=mask))
    ref = mha_reference(x, x, x, wqkv32, bqkv, wo32, bo, mask=mask)
    assert out.shape == (B, S, D) and out.dtype == jnp.float32
    assert float(jnp.max(jnp.abs(out - ref))) < 5e-2

    # 2) Same call with f32 weights (tighter check of kernel math incl. approx recip).
    out32 = jax.block_until_ready(
        multi_head_attention(x, x, x, wqkv32, bqkv, wo32, bo, mask=mask))
    assert float(jnp.max(jnp.abs(out32 - ref))) < 1e-2

    # 3) Cross-attention (distinct q vs k/v, longer keys, mask=None), bf16 output.
    S_kv = 16
    kv_in = jax.random.normal(kkv, (B, S_kv, D), jnp.float32)
    out_x = jax.block_until_ready(
        multi_head_attention(x, kv_in, kv_in, wqkv16, bqkv, wo16, bo,
                             mask=None, out_dtype=jnp.bfloat16))
    ref_x = mha_reference(x, kv_in, kv_in, wqkv32, bqkv, wo32, bo, mask=None)
    assert out_x.shape == (B, S, D) and out_x.dtype == jnp.bfloat16
    assert float(jnp.max(jnp.abs(out_x.astype(jnp.float32) - ref_x))) < 5e-2

    # 4) Query-tiled path (bounded-VMEM structure): Sq=16, block_q=8 -> grid (2, 2).
    x2 = jax.random.normal(kx2, (B, 16, D), jnp.float32)
    out_t = jax.block_until_ready(
        multi_head_attention(x2, x2, x2, wqkv16, bqkv, wo16, bo,
                             mask=None, block_b=1, block_q=8))
    ref_t = mha_reference(x2, x2, x2, wqkv32, bqkv, wo32, bo, mask=None)
    assert out_t.shape == (B, 16, D)
    assert float(jnp.max(jnp.abs(out_t - ref_t))) < 5e-2

    print("KERNEL_OK")
</pallas_src>

<mosaic_0001>
module attributes {stable_mosaic.version = 11 : i64} {
  func.func @_mha_kernel(%arg0: i32, %arg1: i32, %arg2: memref<1x8x256xf32, #tpu.memory_space<vmem>>, %arg3: memref<1x1x8xf32, #tpu.memory_space<vmem>>, %arg4: memref<256x768xbf16, #tpu.memory_space<vmem>>, %arg5: memref<1x768xf32, #tpu.memory_space<vmem>>, %arg6: memref<256x256xbf16, #tpu.memory_space<vmem>>, %arg7: memref<1x256xf32, #tpu.memory_space<vmem>>, %arg8: memref<1x8x256xf32, #tpu.memory_space<vmem>>) attributes {dimension_semantics = [#tpu.dimension_semantics<parallel>, #tpu.dimension_semantics<parallel>], iteration_bounds = array<i64: 2, 1>, scalar_prefetch = 0 : i64, scratch_operands = 0 : i64, tpu.core_type = #tpu.core_type<tc>, window_params = [{transform_indices = @transform_0, window_bounds = array<i64: 1, 8, 256>}, {transform_indices = @transform_1, window_bounds = array<i64: 1, 1, 8>}, {pipeline_mode = #tpu.pipeline_mode<synchronous>, transform_indices = @transform_2, window_bounds = array<i64: 256, 768>}, {pipeline_mode = #tpu.pipeline_mode<synchronous>, transform_indices = @transform_3, window_bounds = array<i64: 1, 768>}, {pipeline_mode = #tpu.pipeline_mode<synchronous>, transform_indices = @transform_4, window_bounds = array<i64: 256, 256>}, {pipeline_mode = #tpu.pipeline_mode<synchronous>, transform_indices = @transform_5, window_bounds = array<i64: 1, 256>}, {transform_indices = @transform_6, window_bounds = array<i64: 1, 8, 256>}]} {
    %c0 = arith.constant 0 : index
    %c0_0 = arith.constant 0 : index
    %c0_1 = arith.constant 0 : index
    %0 = vector.load %arg2[%c0, %c0_0, %c0_1] : memref<1x8x256xf32, #tpu.memory_space<vmem>>, vector<1x8x256xf32>
    %1 = vector.shape_cast %0 : vector<1x8x256xf32> to vector<8x256xf32>
    %2 = arith.truncf %1 : vector<8x256xf32> to vector<8x256xbf16>
    %c0_2 = arith.constant 0 : index
    %c0_3 = arith.constant 0 : index
    %3 = vector.load %arg4[%c0_2, %c0_3] : memref<256x768xbf16, #tpu.memory_space<vmem>>, vector<256x768xbf16>
    %cst = arith.constant dense<0.000000e+00> : vector<8x768xf32>
    %4 = tpu.matmul %2, %3, %cst {dimension_numbers = #tpu.dot_dimension_numbers<[1], [0], [0], [1], [0, 0, 1, 1], [], []>} : vector<8x256xbf16>, vector<256x768xbf16>, vector<8x768xf32> -> vector<8x768xf32>
    %c0_4 = arith.constant 0 : index
    %c0_5 = arith.constant 0 : index
    %5 = vector.load %arg5[%c0_4, %c0_5] : memref<1x768xf32, #tpu.memory_space<vmem>>, vector<1x768xf32>
    %6 = vector.broadcast %5 : vector<1x768xf32> to vector<8x768xf32>
    %7 = arith.addf %4, %6 : vector<8x768xf32>
    %8 = vector.extract_strided_slice %7 {offsets = [0, 0], sizes = [8, 256], strides = [1, 1]} : vector<8x768xf32> to vector<8x256xf32>
    %cst_6 = arith.constant 0.176776692 : f32
    %9 = vector.broadcast %cst_6 : f32 to vector<8x256xf32>
    %10 = arith.mulf %8, %9 : vector<8x256xf32>
    %11 = vector.extract_strided_slice %7 {offsets = [0, 256], sizes = [8, 256], strides = [1, 1]} : vector<8x768xf32> to vector<8x256xf32>
    %12 = vector.extract_strided_slice %7 {offsets = [0, 512], sizes = [8, 256], strides = [1, 1]} : vector<8x768xf32> to vector<8x256xf32>
    %13 = vector.shape_cast %10 : vector<8x256xf32> to vector<1x8x8x32xf32>
    %14 = tpu.transpose %13, [0, 2, 1, 3] : vector<1x8x8x32xf32> -> vector<1x8x8x32xf32>
    %15 = vector.shape_cast %14 : vector<1x8x8x32xf32> to vector<8x8x32xf32>
    %16 = vector.shape_cast %11 : vector<8x256xf32> to vector<1x8x8x32xf32>
    %17 = tpu.transpose %16, [0, 2, 1, 3] : vector<1x8x8x32xf32> -> vector<1x8x8x32xf32>
    %18 = vector.shape_cast %17 : vector<1x8x8x32xf32> to vector<8x8x32xf32>
    %19 = vector.shape_cast %12 : vector<8x256xf32> to vector<1x8x8x32xf32>
    %20 = tpu.transpose %19, [0, 2, 1, 3] : vector<1x8x8x32xf32> -> vector<1x8x8x32xf32>
    %21 = vector.shape_cast %20 : vector<1x8x8x32xf32> to vector<8x8x32xf32>
    %22 = arith.truncf %15 : vector<8x8x32xf32> to vector<8x8x32xbf16>
    %23 = arith.truncf %18 : vector<8x8x32xf32> to vector<8x8x32xbf16>
    "tpu.trace_start"() <{level = 10 : i32, message = "bqd,bkd->bqk"}> : () -> ()
    %cst_7 = arith.constant dense<0.000000e+00> : vector<8x8x8xf32>
    %24 = tpu.matmul %22, %23, %cst_7 {dimension_numbers = #tpu.dot_dimension_numbers<[2], [2], [1], [1], [0, 0, 0, 1, 1, 1], [0], [0]>} : vector<8x8x32xbf16>, vector<8x8x32xbf16>, vector<8x8x8xf32> -> vector<8x8x8xf32>
    "tpu.trace_stop"() : () -> ()
    %25 = vector.shape_cast %24 : vector<8x8x8xf32> to vector<1x8x8x8xf32>
    %c0_8 = arith.constant 0 : index
    %c0_9 = arith.constant 0 : index
    %c0_10 = arith.constant 0 : index
    %26 = vector.load %arg3[%c0_8, %c0_9, %c0_10] : memref<1x1x8xf32, #tpu.memory_space<vmem>>, vector<1x1x8xf32>
    %27 = vector.shape_cast %26 : vector<1x1x8xf32> to vector<1x1x1x8xf32>
    %28 = vector.broadcast %27 : vector<1x1x1x8xf32> to vector<1x8x8x8xf32>
    %29 = arith.addf %25, %28 : vector<1x8x8x8xf32>
    %cst_11 = arith.constant dense<0xFF800000> : vector<1x8x8xf32>
    %30 = vector.multi_reduction <maximumf>, %29, %cst_11 [3] : vector<1x8x8x8xf32> to vector<1x8x8xf32>
    %31 = vector.shape_cast %30 : vector<1x8x8xf32> to vector<1x8x8x1xf32>
    %32 = vector.broadcast %31 : vector<1x8x8x1xf32> to vector<1x8x8x8xf32>
    %33 = arith.subf %29, %32 : vector<1x8x8x8xf32>
    %34 = math.exp %33 : vector<1x8x8x8xf32>
    %cst_12 = arith.constant dense<0.000000e+00> : vector<1x8x8xf32>
    %35 = vector.multi_reduction <add>, %34, %cst_12 [3] : vector<1x8x8x8xf32> to vector<1x8x8xf32>
    %36 = vector.shape_cast %35 : vector<1x8x8xf32> to vector<1x8x8x1xf32>
    %37 = tpu.reciprocal %36 {approx = true} : vector<1x8x8x1xf32> -> vector<1x8x8x1xf32>
    %38 = vector.broadcast %37 : vector<1x8x8x1xf32> to vector<1x8x8x8xf32>
    %39 = arith.mulf %34, %38 : vector<1x8x8x8xf32>
    %40 = vector.shape_cast %39 : vector<1x8x8x8xf32> to vector<8x8x8xf32>
    %41 = arith.truncf %40 : vector<8x8x8xf32> to vector<8x8x8xbf16>
    %42 = arith.truncf %21 : vector<8x8x32xf32> to vector<8x8x32xbf16>
    "tpu.trace_start"() <{level = 10 : i32, message = "bqk,bkd->bqd"}> : () -> ()
    %cst_13 = arith.constant dense<0.000000e+00> : vector<8x8x32xf32>
    %43 = tpu.matmul %41, %42, %cst_13 {dimension_numbers = #tpu.dot_dimension_numbers<[2], [1], [1], [2], [0, 0, 0, 1, 1, 2], [0], [0]>} : vector<8x8x8xbf16>, vector<8x8x32xbf16>, vector<8x8x32xf32> -> vector<8x8x32xf32>
    "tpu.trace_stop"() : () -> ()
    %44 = vector.shape_cast %43 : vector<8x8x32xf32> to vector<1x8x8x32xf32>
    %cst_14 = arith.constant 0.000000e+00 : f32
    %45 = vector.broadcast %cst_14 : f32 to vector<8x256xf32>
    %46 = vector.extract_strided_slice %44 {offsets = [0, 0, 0, 0], sizes = [1, 1, 8, 32], strides = [1, 1, 1, 1]} : vector<1x8x8x32xf32> to vector<1x1x8x32xf32>
    %47 = vector.shape_cast %46 : vector<1x1x8x32xf32> to vector<1x8x32xf32>
    %48 = vector.shape_cast %47 : vector<1x8x32xf32> to vector<8x32xf32>
    %49 = arith.truncf %48 : vector<8x32xf32> to vector<8x32xbf16>
    %c0_15 = arith.constant 0 : index
    %c0_16 = arith.constant 0 : index
    %50 = vector.load %arg6[%c0_15, %c0_16] : memref<256x256xbf16, #tpu.memory_space<vmem>>, vector<32x256xbf16>
    %cst_17 = arith.constant dense<0.000000e+00> : vector<8x256xf32>
    %51 = tpu.matmul %49, %50, %cst_17 {dimension_numbers = #tpu.dot_dimension_numbers<[1], [0], [0], [1], [0, 0, 1, 1], [], []>} : vector<8x32xbf16>, vector<32x256xbf16>, vector<8x256xf32> -> vector<8x256xf32>
    %52 = arith.addf %45, %51 : vector<8x256xf32>
    %53 = vector.extract_strided_slice %44 {offsets = [0, 1, 0, 0], sizes = [1, 1, 8, 32], strides = [1, 1, 1, 1]} : vector<1x8x8x32xf32> to vector<1x1x8x32xf32>
    %54 = vector.shape_cast %53 : vector<1x1x8x32xf32> to vector<1x8x32xf32>
    %55 = vector.shape_cast %54 : vector<1x8x32xf32> to vector<8x32xf32>
    %56 = arith.truncf %55 : vector<8x32xf32> to vector<8x32xbf16>
    %c32 = arith.constant 32 : index
    %c0_18 = arith.constant 0 : index
    %57 = vector.load %arg6[%c32, %c0_18] : memref<256x256xbf16, #tpu.memory_space<vmem>>, vector<32x256xbf16>
    %cst_19 = arith.constant dense<0.000000e+00> : vector<8x256xf32>
    %58 = tpu.matmul %56, %57, %cst_19 {dimension_numbers = #tpu.dot_dimension_numbers<[1], [0], [0], [1], [0, 0, 1, 1], [], []>} : vector<8x32xbf16>, vector<32x256xbf16>, vector<8x256xf32> -> vector<8x256xf32>
    %59 = arith.addf %52, %58 : vector<8x256xf32>
    %60 = vector.extract_strided_slice %44 {offsets = [0, 2, 0, 0], sizes = [1, 1, 8, 32], strides = [1, 1, 1, 1]} : vector<1x8x8x32xf32> to vector<1x1x8x32xf32>
    %61 = vector.shape_cast %60 : vector<1x1x8x32xf32> to vector<1x8x32xf32>
    %62 = vector.shape_cast %61 : vector<1x8x32xf32> to vector<8x32xf32>
    %63 = arith.truncf %62 : vector<8x32xf32> to vector<8x32xbf16>
    %c64 = arith.constant 64 : index
    %c0_20 = arith.constant 0 : index
    %64 = vector.load %arg6[%c64, %c0_20] : memref<256x256xbf16, #tpu.memory_space<vmem>>, vector<32x256xbf16>
    %cst_21 = arith.constant dense<0.000000e+00> : vector<8x256xf32>
    %65 = tpu.matmul %63, %64, %cst_21 {dimension_numbers = #tpu.dot_dimension_numbers<[1], [0], [0], [1], [0, 0, 1, 1], [], []>} : vector<8x32xbf16>, vector<32x256xbf16>, vector<8x256xf32> -> vector<8x256xf32>
    %66 = arith.addf %59, %65 : vector<8x256xf32>
    %67 = vector.extract_strided_slice %44 {offsets = [0, 3, 0, 0], sizes = [1, 1, 8, 32], strides = [1, 1, 1, 1]} : vector<1x8x8x32xf32> to vector<1x1x8x32xf32>
    %68 = vector.shape_cast %67 : vector<1x1x8x32xf32> to vector<1x8x32xf32>
    %69 = vector.shape_cast %68 : vector<1x8x32xf32> to vector<8x32xf32>
    %70 = arith.truncf %69 : vector<8x32xf32> to vector<8x32xbf16>
    %c96 = arith.constant 96 : index
    %c0_22 = arith.constant 0 : index
    %71 = vector.load %arg6[%c96, %c0_22] : memref<256x256xbf16, #tpu.memory_space<vmem>>, vector<32x256xbf16>
    %cst_23 = arith.constant dense<0.000000e+00> : vector<8x256xf32>
    %72 = tpu.matmul %70, %71, %cst_23 {dimension_numbers = #tpu.dot_dimension_numbers<[1], [0], [0], [1], [0, 0, 1, 1], [], []>} : vector<8x32xbf16>, vector<32x256xbf16>, vector<8x256xf32> -> vector<8x256xf32>
    %73 = arith.addf %66, %72 : vector<8x256xf32>
    %74 = vector.extract_strided_slice %44 {offsets = [0, 4, 0, 0], sizes = [1, 1, 8, 32], strides = [1, 1, 1, 1]} : vector<1x8x8x32xf32> to vector<1x1x8x32xf32>
    %75 = vector.shape_cast %74 : vector<1x1x8x32xf32> to vector<1x8x32xf32>
    %76 = vector.shape_cast %75 : vector<1x8x32xf32> to vector<8x32xf32>
    %77 = arith.truncf %76 : vector<8x32xf32> to vector<8x32xbf16>
    %c128 = arith.constant 128 : index
    %c0_24 = arith.constant 0 : index
    %78 = vector.load %arg6[%c128, %c0_24] : memref<256x256xbf16, #tpu.memory_space<vmem>>, vector<32x256xbf16>
    %cst_25 = arith.constant dense<0.000000e+00> : vector<8x256xf32>
    %79 = tpu.matmul %77, %78, %cst_25 {dimension_numbers = #tpu.dot_dimension_numbers<[1], [0], [0], [1], [0, 0, 1, 1], [], []>} : vector<8x32xbf16>, vector<32x256xbf16>, vector<8x256xf32> -> vector<8x256xf32>
    %80 = arith.addf %73, %79 : vector<8x256xf32>
    %81 = vector.extract_strided_slice %44 {offsets = [0, 5, 0, 0], sizes = [1, 1, 8, 32], strides = [1, 1, 1, 1]} : vector<1x8x8x32xf32> to vector<1x1x8x32xf32>
    %82 = vector.shape_cast %81 : vector<1x1x8x32xf32> to vector<1x8x32xf32>
    %83 = vector.shape_cast %82 : vector<1x8x32xf32> to vector<8x32xf32>
    %84 = arith.truncf %83 : vector<8x32xf32> to vector<8x32xbf16>
    %c160 = arith.constant 160 : index
    %c0_26 = arith.constant 0 : index
    %85 = vector.load %arg6[%c160, %c0_26] : memref<256x256xbf16, #tpu.memory_space<vmem>>, vector<32x256xbf16>
    %cst_27 = arith.constant dense<0.000000e+00> : vector<8x256xf32>
    %86 = tpu.matmul %84, %85, %cst_27 {dimension_numbers = #tpu.dot_dimension_numbers<[1], [0], [0], [1], [0, 0, 1, 1], [], []>} : vector<8x32xbf16>, vector<32x256xbf16>, vector<8x256xf32> -> vector<8x256xf32>
    %87 = arith.addf %80, %86 : vector<8x256xf32>
    %88 = vector.extract_strided_slice %44 {offsets = [0, 6, 0, 0], sizes = [1, 1, 8, 32], strides = [1, 1, 1, 1]} : vector<1x8x8x32xf32> to vector<1x1x8x32xf32>
    %89 = vector.shape_cast %88 : vector<1x1x8x32xf32> to vector<1x8x32xf32>
    %90 = vector.shape_cast %89 : vector<1x8x32xf32> to vector<8x32xf32>
    %91 = arith.truncf %90 : vector<8x32xf32> to vector<8x32xbf16>
    %c192 = arith.constant 192 : index
    %c0_28 = arith.constant 0 : index
    %92 = vector.load %arg6[%c192, %c0_28] : memref<256x256xbf16, #tpu.memory_space<vmem>>, vector<32x256xbf16>
    %cst_29 = arith.constant dense<0.000000e+00> : vector<8x256xf32>
    %93 = tpu.matmul %91, %92, %cst_29 {dimension_numbers = #tpu.dot_dimension_numbers<[1], [0], [0], [1], [0, 0, 1, 1], [], []>} : vector<8x32xbf16>, vector<32x256xbf16>, vector<8x256xf32> -> vector<8x256xf32>
    %94 = arith.addf %87, %93 : vector<8x256xf32>
    %95 = vector.extract_strided_slice %44 {offsets = [0, 7, 0, 0], sizes = [1, 1, 8, 32], strides = [1, 1, 1, 1]} : vector<1x8x8x32xf32> to vector<1x1x8x32xf32>
    %96 = vector.shape_cast %95 : vector<1x1x8x32xf32> to vector<1x8x32xf32>
    %97 = vector.shape_cast %96 : vector<1x8x32xf32> to vector<8x32xf32>
    %98 = arith.truncf %97 : vector<8x32xf32> to vector<8x32xbf16>
    %c224 = arith.constant 224 : index
    %c0_30 = arith.constant 0 : index
    %99 = vector.load %arg6[%c224, %c0_30] : memref<256x256xbf16, #tpu.memory_space<vmem>>, vector<32x256xbf16>
    %cst_31 = arith.constant dense<0.000000e+00> : vector<8x256xf32>
    %100 = tpu.matmul %98, %99, %cst_31 {dimension_numbers = #tpu.dot_dimension_numbers<[1], [0], [0], [1], [0, 0, 1, 1], [], []>} : vector<8x32xbf16>, vector<32x256xbf16>, vector<8x256xf32> -> vector<8x256xf32>
    %101 = arith.addf %94, %100 : vector<8x256xf32>
    %c0_32 = arith.constant 0 : index
    %c0_33 = arith.constant 0 : index
    %102 = vector.load %arg7[%c0_32, %c0_33] : memref<1x256xf32, #tpu.memory_space<vmem>>, vector<1x256xf32>
    %103 = vector.broadcast %102 : vector<1x256xf32> to vector<8x256xf32>
    %104 = arith.addf %101, %103 : vector<8x256xf32>
    %105 = vector.shape_cast %104 : vector<8x256xf32> to vector<1x8x256xf32>
    %c0_34 = arith.constant 0 : index
    %c0_35 = arith.constant 0 : index
    %c0_36 = arith.constant 0 : index
    %106 = vector.load %arg8[%c0_34, %c0_35, %c0_36] : memref<1x8x256xf32, #tpu.memory_space<vmem>>, vector<1x8x256xf32>
    tpu.vector_store %arg8[%c0_34, %c0_35, %c0_36], %105 {strides = array<i32>} : memref<1x8x256xf32, #tpu.memory_space<vmem>>, vector<1x8x256xf32>,
    return
  }
  func.func @transform_0(%arg0: i32, %arg1: i32) -> (i32, i32, i32) {
    %c0_i32 = arith.constant 0 : i32
    %c0_i32_0 = arith.constant 0 : i32
    return %arg0, %arg1, %c0_i32 : i32, i32, i32
  }
  func.func @transform_1(%arg0: i32, %arg1: i32) -> (i32, i32, i32) {
    %c0_i32 = arith.constant 0 : i32
    %c0_i32_0 = arith.constant 0 : i32
    %c0_i32_1 = arith.constant 0 : i32
    return %arg0, %c0_i32, %c0_i32_0 : i32, i32, i32
  }
  func.func @transform_2(%arg0: i32, %arg1: i32) -> (i32, i32) {
    %c0_i32 = arith.constant 0 : i32
    %c0_i32_0 = arith.constant 0 : i32
    %c0_i32_1 = arith.constant 0 : i32
    return %c0_i32, %c0_i32_0 : i32, i32
  }
  func.func @transform_3(%arg0: i32, %arg1: i32) -> (i32, i32) {
    %c0_i32 = arith.constant 0 : i32
    %c0_i32_0 = arith.constant 0 : i32
    %c0_i32_1 = arith.constant 0 : i32
    return %c0_i32, %c0_i32_0 : i32, i32
  }
  func.func @transform_4(%arg0: i32, %arg1: i32) -> (i32, i32) {
    %c0_i32 = arith.constant 0 : i32
    %c0_i32_0 = arith.constant 0 : i32
    %c0_i32_1 = arith.constant 0 : i32
    return %c0_i32, %c0_i32_0 : i32, i32
  }
  func.func @transform_5(%arg0: i32, %arg1: i32) -> (i32, i32) {
    %c0_i32 = arith.constant 0 : i32
    %c0_i32_0 = arith.constant 0 : i32
    %c0_i32_1 = arith.constant 0 : i32
    return %c0_i32, %c0_i32_0 : i32, i32
  }
  func.func @transform_6(%arg0: i32, %arg1: i32) -> (i32, i32, i32) {
    %c0_i32 = arith.constant 0 : i32
    %c0_i32_0 = arith.constant 0 : i32
    return %arg0, %arg1, %c0_i32 : i32, i32, i32
  }
}

</mosaic_0001>

<bundles_post_ra>
// kernel: tpu_custom_call.1
= control target key start
LH: loop header
LB: loop body
LE: loop exit
PB: predicated region body
PF: predicated region fallthrough
CT: control target
= control target key end

     0   :  { %11 = vsyncpa [#allocation3], 0  ;;  %s5017_s0 = inlined_call_operand.hbm [shape: f32[2,8,256], index: 0, kind: input, shape index: {}]   ;;  %s5018_s1 = inlined_call_operand.vmem [shape: f32[2,1,8], index: 1, kind: input, shape index: {}]   ;;  %s5019_s2 = inlined_call_operand.hbm [shape: bf16[256,768], index: 2, kind: input, shape index: {}]   ;;  %s5020_s3 = inlined_call_operand.vmem [shape: f32[1,768], index: 3, kind: input, shape index: {}]   ;;  %s5021_s4 = inlined_call_operand.hbm [shape: bf16[256,256], index: 4, kind: input, shape index: {}]   ;;  %s5022_s5 = inlined_call_operand.vmem [shape: f32[1,256], index: 5, kind: input, shape index: {}]   ;;  %s5023_s6 = inlined_call_operand.hbm [shape: f32[2,8,256], index: 6, kind: output, shape index: {}]  }
   0x1   :  { %13 = vsyncpa [#allocation3 + $0x1], 0 }
   0x2   :  { %14 = vsyncpa [#allocation6], 0 }
   0x3   :  { %15 = vsyncpa [#allocation4], 0 }
   0x4   :  { %17 = vsyncpa [#allocation4 + $0x1], 0  ;;  %s4396_s21 = smov 0   ;;  %s4398_s22 = smov 0  }
   0x5   :  { %s4400_s23 = smov 0   ;;  %s4402_s24 = smov 0  }
   0x6   :  { %s4404_s25 = smov 0   ;;  %s4406_s26 = smov 0  }
   0x7 LB: > { %s3526_s27 = sadd.s32 4294967295, %s4343_s26   ;;  %s3527_s28 = sadd.s32 4294967294, %s4343_s26   ;;  %s4343_s26 = sphi %s4406_s26, %s23_s26   ;;  %s4339_s25 = sphi %s4404_s25, %s5048_s25   ;;  %s4335_s24 = sphi %s4402_s24, %s5047_s24   ;;  %s4331_s23 = sphi %s4400_s23, %s5046_s23   ;;  %s4327_s22 = sphi %s4398_s22, %s5045_s22   ;;  %s4323_s21 = sphi %s4396_s21, %s5044_s21  }
   0x8   : > { %p57_p0 = scmp.ne.s32.totalorder %s4327_s22, %s4323_s21  ;;  %p4430_p1 = scmp.eq.s32.totalorder %s3526_s27, 0 }
   0x9   : > { %p4434_p2 = scmp.eq.s32.totalorder %s3526_s27, 1  ;;  %p199_p3 = scmp.eq.s32.totalorder %s3527_s28, 1 }
   0xa   : > { %s5029_s29 = scalar_select %p4430_p1, 1, 0 }
   0xb   : > { %p4440_p4 = por %p4430_p1, %p57_p0  ;;  %p3528_p5 = scmp.ge.s32.totalorder %s4343_s26, 1 }
   0xc   : > { %p4445_p6 = por %p199_p3, %p57_p0  ;;  %p206_p7 = scmp.lt.s32.totalorder %s4343_s26, 3 }
   0xd   : > { %s5031_s7 = scalar_select %p4440_p4, 1, 0 }
   0xe   : > { %s5032_s8 = scalar_select %p4445_p6, 1, 0 }
   0xf   : > { %p4450_p8 = pnand %p3528_p5, %p206_p7  ;;  %s4345_s10 = smov [#allocation5]  }
  0x10   : > { %5033 = sst [smem:[#allocation12_spill]] %s5032_s8  ;;  %s218_s11 = sshll.u32 %s4345_s10, 4  ;;  %s4454_s11 = int_to_ptr.vmem [resolvable:$true] %s218_s11 }
  0x11   : > { %p3864_p9 = pneg %p4450_p8  ;;  %s4346_s13 = smov [#allocation7]  }
  0x12   : > { %s234_s14 = sshll.u32 %s4346_s13, 4  ;;  %s4171_s17 = scalar_lea.hbm %s5019_s2, 12288  ;;  %s4465_s14 = int_to_ptr.vmem [resolvable:$true] %s234_s14 }
  0x13   : > { %p4461_p11 = pnand %p3864_p9, %p4430_p1  ;;  %p4172_p12 = scmp.ne.s32.totalorder %s5019_s2, %s4171_s17 }
  0x14   : > { %p4178_p5 = scmp.lt.u32.totalorder %s4171_s17, %s5019_s2 }
  0x15   : > { %p4173_p13 = pneg %p4461_p11 }
  0x17   : > { %p4174_p0 = pnand %p4173_p13, %p4172_p12 }
  0x19   : > { %p4175_p3 = pneg %p4174_p0 }
  0x1b   : > { %p4180_p7 = pnand %p4178_p5, %p4175_p3 }
  0x1d   : > { %4183 = shalt.err (!%p4180_p7)
}
  0x1e   : > { %s4184_s28 = scalar_lea.vmem %s4454_s11, 12288  ;;  %p4192_p1 = scmp.lt.s32.totalorder %s4454_s11, %s4454_s11 }
  0x1f   : > { %p4185_p9 = scmp.ne.s32.totalorder %s4454_s11, %s4184_s28  ;;  %p4193_p12 = scmp.lt.s32.totalorder %s4184_s28, %s4184_s28 }
  0x21   : > { %p4187_p10 = pnand %p4185_p9, %p4173_p13  ;;  %p4194_p0 = por %p4193_p12, %p4192_p1 }
  0x23   : > { %p4188_p6 = pneg %p4187_p10 }
  0x25   : > { %p4195_p4 = pnand %p4194_p0, %p4188_p6 }
  0x27   : > { %4198 = shalt.err (!%p4195_p4)
}
  0x28   : > { %s4347_s10 = smov 384   ;;  %s4348_s13 = smov 24  }
  0x29   : > { %3867 = dma.hbm_to_vmem [thread:$0]  (!%p4461_p11), %s5019_s2, 12288, %s4454_s11, [#allocation6], %s4347_s10, %s4347_s10, %s4348_s13  }
  0x2a   : > { %s4199_s19 = scalar_lea.hbm %s5021_s4, 4096 }
  0x2b   : > { %p4200_p1 = scmp.ne.s32.totalorder %s5021_s4, %s4199_s19  ;;  %p4206_p10 = scmp.lt.u32.totalorder %s4199_s19, %s5021_s4 }
  0x2d   : > { %p4202_p4 = pnand %p4200_p1, %p4173_p13 }
  0x2f   : > { %p4203_p6 = pneg %p4202_p4 }
  0x31   : > { %p4208_p3 = pnand %p4206_p10, %p4203_p6 }
  0x33   : > { %4211 = shalt.err (!%p4208_p3)
}
  0x34   : > { %s4212_s11 = scalar_lea.vmem %s4465_s14, 4096  ;;  %p4220_p12 = scmp.lt.s32.totalorder %s4465_s14, %s4465_s14 }
  0x35   : > { %p4213_p5 = scmp.ne.s32.totalorder %s4465_s14, %s4212_s11  ;;  %p4221_p0 = scmp.lt.s32.totalorder %s4212_s11, %s4212_s11 }
  0x37   : > { %p4215_p7 = pnand %p4213_p5, %p4173_p13  ;;  %p4222_p1 = por %p4221_p0, %p4220_p12 }
  0x39   : > { %p4216_p9 = pneg %p4215_p7 }
  0x3b   : > { %p4223_p4 = pnand %p4222_p1, %p4216_p9 }
  0x3d   : > { %4226 = shalt.err (!%p4223_p4)
}
  0x3e   : > { %s4349_s8 = smov 128   ;;  %s4350_s10 = smov 8  }
  0x3f   : > { %3870 = dma.hbm_to_vmem [thread:$0]  (!%p4461_p11), %s5021_s4, 4096, %s4465_s14, [#allocation6], %s4349_s8, %s4349_s8, %s4350_s10  }
  0x40   : > { %s35_s16 = sadd.s32 1, %s4339_s25  ;;  %s44_s17 = sadd.s32 1, %s4331_s23 }
  0x41   : > { %p37_p13 = scmp.ge.s32.totalorder %s35_s16, 2  ;;  %p51_p6 = scmp.ne.s32.totalorder %s4331_s23, %s4327_s22 }
  0x42   : > { %p52_p10 = scmp.eq.s32.totalorder %s4343_s26, 0  ;;  %p3881_p3 = scmp.lt.s32.totalorder %s4343_s26, 2 }
  0x43   : > { %s5050_s16 = smov (%p37_p13, %s35_s16), 0  ;;  %p4529_p7 = por %p4434_p2, %p51_p6 }
  0x44   : > { %p53_p5 = por %p52_p10, %p51_p6  ;;  %s39_s12 = ssub.s32 %s4339_s25, %s5050_s16 }
  0x45   : > { %s5036_s18 = scalar_select %p4529_p7, 1, 0 }
  0x46   : > { %s251_s19 = sand.u32 1, %s4331_s23   ;;  %p42_p9 = scmp.eq.s32.totalorder %s39_s12, 0 }
  0x47   : > { %s3532_s14 = sshll.u32 %s251_s19, 4  ;;  %s3722_s20 = sshll.u32 %s4339_s25, 8 }
  0x48   : > { %s4538_s27 = scalar_select %p42_p9, %s4331_s23, %s44_s17  }
  0x49   : > { %s4543_s8 = scalar_lea.hbm %s5017_s0, %s3722_s20  ;;  %s255_s30 = scalar_lea.vmem [#allocation2], %s3532_s14 }
  0x4a   : > { %s265_s10 = sshll.u32 %s255_s30, 4  ;;  %p4547_p2 = pnand %p3881_p3, %p53_p5  ;;  %s4551_s10 = int_to_ptr.vmem [resolvable:$true] %s265_s10 }
  0x4b   : > { %s252_s15 = scalar_lea.sflag [#allocation3], %s251_s19  ;;  %s4227_s17 = scalar_lea.hbm %s4543_s8, 256 }
  0x4c   : > { %p4228_p11 = scmp.ne.s32.totalorder %s4543_s8, %s4227_s17  ;;  %p4229_p12 = pneg %p4547_p2 }
  0x4d   : > { %s4232_s20 = scalar_lea.hbm %s5017_s0, 512  ;;  %p4233_p4 = scmp.lt.u32.totalorder %s4543_s8, %s5017_s0 }
  0x4e   : > { %p4230_p0 = pnand %p4229_p12, %p4228_p11  ;;  %p4234_p13 = scmp.lt.u32.totalorder %s4232_s20, %s4227_s17 }
  0x4f   : > { %p4236_p10 = scmp.lt.u32.totalorder %s4227_s17, %s4543_s8 }
  0x50   : > { %p4231_p1 = pneg %p4230_p0  ;;  %p4235_p6 = por %p4234_p13, %p4233_p4 }
  0x52   : > { %p4237_p3 = por %p4236_p10, %p4235_p6 }
  0x54   : > { %p4238_p5 = pnand %p4237_p3, %p4231_p1 }
  0x56   : > { %4241 = shalt.err (!%p4238_p5)
}
  0x57   : > { %s4242_s19 = scalar_lea.vmem %s4551_s10, 256  ;;  %s4351_s30 = smov [#allocation2]  }
  0x58   : > { %p4243_p9 = scmp.ne.s32.totalorder %s4551_s10, %s4242_s19  ;;  %s4247_s12 = sshll.u32 %s4351_s30, 4  ;;  %s4248_s12 = int_to_ptr.vmem [resolvable:$false] %s4247_s12 }
  0x59   : > { %s4249_s14 = scalar_lea.vmem %s4248_s12, 512  ;;  %p4250_p7 = scmp.lt.s32.totalorder %s4551_s10, %s4248_s12 }
  0x5a   : > { %p4245_p11 = pnand %p4243_p9, %p4229_p12  ;;  %p4251_p4 = scmp.lt.s32.totalorder %s4249_s14, %s4242_s19 }
  0x5c   : > { %p4246_p0 = pneg %p4245_p11  ;;  %p4252_p13 = por %p4251_p4, %p4250_p7 }
  0x5e   : > { %p4253_p6 = pnand %p4252_p13, %p4246_p0 }
  0x60   : > { %4256 = shalt.err (!%p4253_p6)
}
  0x61   : > { %3874 = dma.hbm_to_vmem [thread:$0]  (!%p4547_p2), %s4543_s8, 256, %s4551_s10, %s252_s15  }
  0x62   : > { %280 = sbr.rel (%p4450_p8) target bundleno = 1633 (0x661), region = 44  ;;  %s4581_s17 = sand.u32 (!%p4450_p8), 1, %s4327_s22  }
  0x63   : > { %s3536_s20 = sshll.u32 (!%p4450_p8), %s4581_s17, 4  ;;  %s283_s28 = scalar_lea.sflag (!%p4450_p8), [#allocation3], %s4581_s17 }
  0x64   : > { %s4587_s11 = scalar_lea.vmem (!%p4450_p8), [#allocation2], %s3536_s20  ;;  %p5038_p7 = scmp.ne.s32.totalorder (!%p4450_p8), %s5031_s7, 0 }
  0x69   : > { %4310 = dma.done.wait (%p5038_p7), %s283_s28, 256  }
  0x6a   : > { %4312 = vsyncadd (%p5038_p7), %s283_s28, 4294967040  ;;  %p5039_p2 = scmp.ne.s32.totalorder %s5029_s29, 0 }
  0x6c   : > { %4314 = dma.done.wait (%p5039_p2), [#allocation6], 16384  }
  0x6d   : > { %4316 = vsyncadd (%p5039_p2), [#allocation6], 4294950912  ;;  %v3947_v0 = vld [vmem:[#allocation5 + $0xc] ss:$24 sps:$4 sm:$0xff]   ;;  %v3949_v1 = vld [vmem:[#allocation5 + $0x8] ss:$24 sps:$4 sm:$0xff]  }
  0x6e   : > { %983 = vmatprep.subr.bf16.mxu1 %v3947_v0  ;;  %v3950_v2 = vld [vmem:[#allocation5 + $0x4] ss:$24 sps:$4 sm:$0xff]   ;;  %v3952_v3 = vld [vmem:[#allocation5] ss:$24 sps:$4 sm:$0xff]   ;;  %v3956_v6 = vld [vmem:[#allocation5 + $0x34] ss:$24 sps:$4 sm:$0xff]  }
  0x6f   : > { %984 = vmatpush1.bf16.msra.mxu1 %v3949_v1  ;;  %v3953_v4 = vld [vmem:[#allocation5 + $0x3c] ss:$24 sps:$4 sm:$0xff]   ;;  %v3955_v5 = vld [vmem:[#allocation5 + $0x38] ss:$24 sps:$4 sm:$0xff]   ;;  %942 = vmatprep.subr.bf16.mxu0 %v3950_v2  ;;  %v3959_v8 = vld [vmem:[#allocation5 + $0x6c] ss:$24 sps:$4 sm:$0xff]  }
  0x70   : > { %943 = vmatpush1.bf16.msra.mxu0 %v3952_v3  ;;  %985 = vmatprep.subr.bf16.mxu1 %v3953_v4  ;;  %v3958_v7 = vld [vmem:[#allocation5 + $0x30] ss:$24 sps:$4 sm:$0xff]   ;;  %v3962_v10 = vld [vmem:[#allocation5 + $0x64] ss:$24 sps:$4 sm:$0xff]   ;;  %v3964_v12 = vld [vmem:[#allocation5 + $0x60] ss:$24 sps:$4 sm:$0xff]  }
  0x71   : > { %944 = vmatprep.subr.bf16.mxu0 %v3956_v6  ;;  %v3961_v9 = vld [vmem:[#allocation5 + $0x68] ss:$24 sps:$4 sm:$0xff]   ;;  %v3965_v11 = vld [vmem:[#allocation5 + $0x9c] ss:$24 sps:$4 sm:$0xff]   ;;  %v3967_v14 = vld [vmem:[#allocation5 + $0x98] ss:$24 sps:$4 sm:$0xff]  }
  0x72   : > { %v3968_v13 = vld [vmem:[#allocation5 + $0x94] ss:$24 sps:$4 sm:$0xff]   ;;  %v3970_v16 = vld [vmem:[#allocation5 + $0x90] ss:$24 sps:$4 sm:$0xff]   ;;  %v3974_v17 = vld [vmem:[#allocation5 + $0xc4] ss:$24 sps:$4 sm:$0xff]  }
  0x73   : > { %986 = vmatpush1.bf16.msra.mxu1 %v3955_v5  ;;  %v3971_v15 = vld [vmem:[#allocation5 + $0xcc] ss:$24 sps:$4 sm:$0xff]   ;;  %v3973_v18 = vld [vmem:[#allocation5 + $0xc8] ss:$24 sps:$4 sm:$0xff]   ;;  %v3977_v19 = vld [vmem:[#allocation5 + $0xfc] ss:$24 sps:$4 sm:$0xff]  }
  0x74   : > { %987 = vmatprep.subr.bf16.mxu1 %v3959_v8  ;;  %945 = vmatpush1.bf16.msra.mxu0 %v3958_v7  ;;  %v3976_v20 = vld [vmem:[#allocation5 + $0xc0] ss:$24 sps:$4 sm:$0xff]   ;;  %v3980_v21 = vld [vmem:[#allocation5 + $0xf4] ss:$24 sps:$4 sm:$0xff]   ;;  %v3982_v24 = vld [vmem:[#allocation5 + $0xf0] ss:$24 sps:$4 sm:$0xff]  }
  0x75   : > { %946 = vmatprep.subr.bf16.mxu0 %v3962_v10  ;;  %v3979_v22 = vld [vmem:[#allocation5 + $0xf8] ss:$24 sps:$4 sm:$0xff]   ;;  %v3983_v23 = vld [vmem:[#allocation5 + $0x12c] ss:$24 sps:$4 sm:$0xff]   ;;  %v3985_v26 = vld [vmem:[#allocation5 + $0x128] ss:$24 sps:$4 sm:$0xff]  }
  0x76   : > { %v3986_v25 = vld [vmem:[#allocation5 + $0x124] ss:$24 sps:$4 sm:$0xff]   ;;  %v3988_v28 = vld [vmem:[#allocation5 + $0x120] ss:$24 sps:$4 sm:$0xff]   ;;  %v3992_v29 = vld [vmem:[#allocation5 + $0x154] ss:$24 sps:$4 sm:$0xff]  }
  0x77   : > { %988 = vmatpush1.bf16.msra.mxu1 %v3961_v9  ;;  %v3989_v27 = vld [vmem:[#allocation5 + $0x15c] ss:$24 sps:$4 sm:$0xff]   ;;  %v3991_v30 = vld [vmem:[#allocation5 + $0x158] ss:$24 sps:$4 sm:$0xff]   ;;  %v3995_v31 = vld [vmem:[#allocation5 + $0x18c] ss:$24 sps:$4 sm:$0xff]  }
  0x78   : > { %989 = vmatprep.subr.bf16.mxu1 %v3965_v11  ;;  %947 = vmatpush1.bf16.msra.mxu0 %v3964_v12  ;;  %v3994_v32 = vld [vmem:[#allocation5 + $0x150] ss:$24 sps:$4 sm:$0xff]   ;;  %v3998_v33 = vld [vmem:[#allocation5 + $0x184] ss:$24 sps:$4 sm:$0xff]   ;;  %v4000_v36 = vld [vmem:[#allocation5 + $0x180] ss:$24 sps:$4 sm:$0xff]  }
  0x79   : > { %948 = vmatprep.subr.bf16.mxu0 %v3968_v13  ;;  %v3997_v34 = vld [vmem:[#allocation5 + $0x188] ss:$24 sps:$4 sm:$0xff]   ;;  %v4001_v35 = vld [vmem:[#allocation5 + $0x1bc] ss:$24 sps:$4 sm:$0xff]   ;;  %v4003_v38 = vld [vmem:[#allocation5 + $0x1b8] ss:$24 sps:$4 sm:$0xff]  }
  0x7a   : > { %v4004_v37 = vld [vmem:[#allocation5 + $0x1b4] ss:$24 sps:$4 sm:$0xff]   ;;  %v4006_v40 = vld [vmem:[#allocation5 + $0x1b0] ss:$24 sps:$4 sm:$0xff]   ;;  %v4010_v41 = vld [vmem:[#allocation5 + $0x1e4] ss:$24 sps:$4 sm:$0xff]  }
  0x7b   : > { %990 = vmatpush1.bf16.msra.mxu1 %v3967_v14  ;;  %v4007_v39 = vld [vmem:[#allocation5 + $0x1ec] ss:$24 sps:$4 sm:$0xff]   ;;  %v4009_v42 = vld [vmem:[#allocation5 + $0x1e8] ss:$24 sps:$4 sm:$0xff]   ;;  %v4013_v43 = vld [vmem:[#allocation5 + $0x21c] ss:$24 sps:$4 sm:$0xff]  }
  0x7c   : > { %991 = vmatprep.subr.bf16.mxu1 %v3971_v15  ;;  %949 = vmatpush1.bf16.msra.mxu0 %v3970_v16  ;;  %v4012_v44 = vld [vmem:[#allocation5 + $0x1e0] ss:$24 sps:$4 sm:$0xff]   ;;  %v4016_v46 = vld [vmem:[#allocation5 + $0x214] ss:$24 sps:$4 sm:$0xff]   ;;  %v4018_v48 = vld [vmem:[#allocation5 + $0x210] ss:$24 sps:$4 sm:$0xff]  }
  0x7d   : > { %950 = vmatprep.subr.bf16.mxu0 %v3974_v17  ;;  %v4015_v45 = vld [vmem:[#allocation5 + $0x218] ss:$24 sps:$4 sm:$0xff]   ;;  %v4019_v49 = vld [vmem:[#allocation5 + $0x24c] ss:$24 sps:$4 sm:$0xff]   ;;  %v4021_v52 = vld [vmem:[#allocation5 + $0x248] ss:$24 sps:$4 sm:$0xff]  }
  0x7e   : > { %v331_v47 = vld [vmem:[%s4587_s11 + $0x8] sm:$0xff]  ;;  %v330_v1 = vld [vmem:[%s4587_s11] sm:$0xff]  ;;  %s4352_s9 = smov 32   ;;  %s4353_s8 = smov 96   ;;  %vm4356_vm0 = vmmov 0   ;;  %vm1959_vm1 = vcmask 261120  }
  0x7f   : > { %992 = vmatpush1.bf16.msra.mxu1 %v3973_v18  ;;  %v333_v50 = vpack.c.bf16 %v331_v47, %v331_v47  ;;  %v4022_v51 = vld [vmem:[#allocation5 + $0x244] ss:$24 sps:$4 sm:$0xff]   ;;  %v4024_v54 = vld [vmem:[#allocation5 + $0x240] ss:$24 sps:$4 sm:$0xff]   ;;  %v4028_v55 = vld [vmem:[#allocation5 + $0x274] ss:$24 sps:$4 sm:$0xff]   ;;  %v4599_v3 = vpack.c.bf16 %v330_v1, %v330_v1 }
  0x80   : > { %993 = vmatprep.subr.bf16.mxu1 %v3977_v19  ;;  %951 = vmatpush1.bf16.msra.mxu0 %v3976_v20  ;;  %v4025_v53 = vld [vmem:[#allocation5 + $0x27c] ss:$24 sps:$4 sm:$0xff]   ;;  %v4027_v56 = vld [vmem:[#allocation5 + $0x278] ss:$24 sps:$4 sm:$0xff]   ;;  %v4031_v57 = vld [vmem:[#allocation5 + $0x2ac] ss:$24 sps:$4 sm:$0xff]  }
  0x81   : > { %952 = vmatprep.subr.bf16.mxu0 %v3980_v21  ;;  %1015 = vmatprep.mubr.bf16.mxu1 %v333_v50  ;;  %v4030_v58 = vld [vmem:[#allocation5 + $0x270] ss:$24 sps:$4 sm:$0xff]   ;;  %v4034_v59 = vld [vmem:[#allocation5 + $0x2a4] ss:$24 sps:$4 sm:$0xff]   ;;  %v4036_v62 = vld [vmem:[#allocation5 + $0x2a0] ss:$24 sps:$4 sm:$0xff]  }
  0x82   : > { %974 = vmatprep.mubr.bf16.mxu0 %v333_v50  ;;  %v4033_v60 = vld [vmem:[#allocation5 + $0x2a8] ss:$24 sps:$4 sm:$0xff]   ;;  %v4037_v61 = vld [vmem:[#allocation5 + $0x2dc] ss:$24 sps:$4 sm:$0xff]   ;;  %v4039_v0 = vld [vmem:[#allocation5 + $0x2d8] ss:$24 sps:$4 sm:$0xff]  }
  0x83   : > { %994 = vmatpush1.bf16.msra.mxu1 %v3979_v22  ;;  %v4040_v63 = vld [vmem:[#allocation5 + $0x2d4] ss:$24 sps:$4 sm:$0xff]   ;;  %v4042_v2 = vld [vmem:[#allocation5 + $0x2d0] ss:$24 sps:$4 sm:$0xff]   ;;  %v4048_v6 = vld [vmem:[#allocation5 + $0x44] ss:$24 sps:$4 sm:$0xff]  }
  0x84   : > { %995 = vmatprep.subr.bf16.mxu1 %v3983_v23  ;;  %953 = vmatpush1.bf16.msra.mxu0 %v3982_v24  ;;  %v4043_v4 = vld [vmem:[#allocation5 + $0x10] ss:$24 sps:$4 sm:$0xff]   ;;  %v4045_v5 = vld [vmem:[#allocation5 + $0x14] ss:$24 sps:$4 sm:$0xff]   ;;  %v4046_v7 = vld [vmem:[#allocation5 + $0x40] ss:$24 sps:$4 sm:$0xff]  }
  0x85   : > { %954 = vmatprep.subr.bf16.mxu0 %v3986_v25  ;;  %v4051_v8 = vld [vmem:[#allocation5 + $0x74] ss:$24 sps:$4 sm:$0xff]   ;;  %v4049_v9 = vld [vmem:[#allocation5 + $0x70] ss:$24 sps:$4 sm:$0xff]   ;;  %v4054_v10 = vld [vmem:[#allocation5 + $0xa4] ss:$24 sps:$4 sm:$0xff]  }
  0x86   : > { %v4052_v11 = vld [vmem:[#allocation5 + $0xa0] ss:$24 sps:$4 sm:$0xff]   ;;  %v4057_v12 = vld [vmem:[#allocation5 + $0xd4] ss:$24 sps:$4 sm:$0xff]   ;;  %v4055_v13 = vld [vmem:[#allocation5 + $0xd0] ss:$24 sps:$4 sm:$0xff]  }
  0x87   : > { %996 = vmatpush1.bf16.msra.mxu1 %v3985_v26  ;;  %v4060_v14 = vld [vmem:[#allocation5 + $0x104] ss:$24 sps:$4 sm:$0xff]   ;;  %v4058_v15 = vld [vmem:[#allocation5 + $0x100] ss:$24 sps:$4 sm:$0xff]   ;;  %v4063_v16 = vld [vmem:[#allocation5 + $0x134] ss:$24 sps:$4 sm:$0xff]  }
  0x88   : > { %997 = vmatprep.subr.bf16.mxu1 %v3989_v27  ;;  %955 = vmatpush1.bf16.msra.mxu0 %v3988_v28  ;;  %v4061_v17 = vld [vmem:[#allocation5 + $0x130] ss:$24 sps:$4 sm:$0xff]   ;;  %v4066_v18 = vld [vmem:[#allocation5 + $0x164] ss:$24 sps:$4 sm:$0xff]   ;;  %v4064_v19 = vld [vmem:[#allocation5 + $0x160] ss:$24 sps:$4 sm:$0xff]  }
  0x89   : > { %956 = vmatprep.subr.bf16.mxu0 %v3992_v29  ;;  %v4069_v20 = vld [vmem:[#allocation5 + $0x194] ss:$24 sps:$4 sm:$0xff]   ;;  %v4067_v21 = vld [vmem:[#allocation5 + $0x190] ss:$24 sps:$4 sm:$0xff]   ;;  %v4072_v22 = vld [vmem:[#allocation5 + $0x1c4] ss:$24 sps:$4 sm:$0xff]  }
  0x8a   : > { %v4070_v23 = vld [vmem:[#allocation5 + $0x1c0] ss:$24 sps:$4 sm:$0xff]   ;;  %v4075_v24 = vld [vmem:[#allocation5 + $0x1f4] ss:$24 sps:$4 sm:$0xff]   ;;  %v4073_v25 = vld [vmem:[#allocation5 + $0x1f0] ss:$24 sps:$4 sm:$0xff]  }
  0x8b   : > { %998 = vmatpush1.bf16.msra.mxu1 %v3991_v30  ;;  %v4078_v26 = vld [vmem:[#allocation5 + $0x224] ss:$24 sps:$4 sm:$0xff]   ;;  %v4076_v27 = vld [vmem:[#allocation5 + $0x220] ss:$24 sps:$4 sm:$0xff]   ;;  %v4081_v28 = vld [vmem:[#allocation5 + $0x254] ss:$24 sps:$4 sm:$0xff]  }
  0x8c   : > { %999 = vmatprep.subr.bf16.mxu1 %v3995_v31  ;;  %957 = vmatpush1.bf16.msra.mxu0 %v3994_v32  ;;  %v4079_v29 = vld [vmem:[#allocation5 + $0x250] ss:$24 sps:$4 sm:$0xff]   ;;  %v4084_v30 = vld [vmem:[#allocation5 + $0x284] ss:$24 sps:$4 sm:$0xff]   ;;  %v4082_v31 = vld [vmem:[#allocation5 + $0x280] ss:$24 sps:$4 sm:$0xff]  }
  0x8d   : > { %958 = vmatprep.subr.bf16.mxu0 %v3998_v33  ;;  %v4087_v32 = vld [vmem:[#allocation5 + $0x2b4] ss:$24 sps:$4 sm:$0xff]   ;;  %v4085_v33 = vld [vmem:[#allocation5 + $0x2b0] ss:$24 sps:$4 sm:$0xff]   ;;  %s4354_s10 = smov 64   ;;  %p326_p8 = scmp.lt.s32.totalorder %s4335_s24, 1 }
  0x8e   : > { %vm2343_vm2 = vcmask 64512   ;;  %vm2451_vm3 = vcmask 1043456   ;;  %s3723_s28 = sshll.u32 %s4335_s24, 8  ;;  %s325_s11 = scalar_lea.vmem [#allocation8], %s3536_s20 }
  0x8f   : > { %1000 = vmatpush1.bf16.msra.mxu1 %v3997_v34  ;;  %v432_v34 = vlaneseq  ;;  %s327_s13 = scalar_select %p326_p8, %s4335_s24, 1 }
  0x90   : > { %1001 = vmatprep.subr.bf16.mxu1 %v4001_v35  ;;  %959 = vmatpush1.bf16.msra.mxu0 %v4000_v36  ;;  %v4090_v36 = vld [vmem:[#allocation5 + $0x2e4] ss:$24 sps:$4 sm:$0xff]   ;;  %s3414_s29 = sshll.u32 %s325_s11, 4  ;;  %s3398_s24 = scalar_lea.sflag [#allocation4], %s4581_s17  ;;  %s4970_s29 = int_to_ptr.vmem [resolvable:$true] %s3414_s29 }
  0x91   : > { %960 = vmatprep.subr.bf16.mxu0 %v4004_v37  ;;  %v4603_v35 = vshrl.u32 %v432_v34, 7  ;;  %v4088_v37 = vld [vmem:[#allocation5 + $0x2e0] ss:$24 sps:$4 sm:$0xff]   ;;  %s328_s30 = scalar_lea.vmem %s5018_s1, %s327_s13  ;;  %s4257_s20 = scalar_lea.vmem %s4970_s29, 256 }
  0x92   : > { %p4258_p12 = scmp.ne.s32.totalorder %s4970_s29, %s4257_s20  ;;  %p5040_p1 = scmp.ne.s32.totalorder %s5036_s18, 0 }
  0x93   : > { %1002 = vmatpush1.bf16.msra.mxu1 %v4003_v38  ;;  %v442_v38 = vsub.s32 2, %v4603_v35 }
  0x94   : > { %1003 = vmatprep.subr.bf16.mxu1 %v4007_v39  ;;  %961 = vmatpush1.bf16.msra.mxu0 %v4006_v40  ;;  %v4609_v39 = vld [vmem:[%s5020_s3] sm:$0x3f]  ;;  %v434_v40 = vsub.s32 0, %v4603_v35  ;;  %p4259_p10 = pnand %p4258_p12, %p5040_p1 }
  0x95   : > { %962 = vmatprep.subr.bf16.mxu0 %v4010_v41  ;;  %v443_v41 = vrot.slane %v4609_v39, %v442_v38 }
  0x96   : > { %p4260_p3 = pneg %p4259_p10 }
  0x97   : > { %1004 = vmatpush1.bf16.msra.mxu1 %v4009_v42  ;;  %v435_v42 = vrot.slane %v4609_v39, %v434_v40 }
  0x98   : > { %1005 = vmatprep.subr.bf16.mxu1 %v4013_v43  ;;  %963 = vmatpush1.bf16.msra.mxu0 %v4012_v44 }
  0x99   : > { %964 = vmatprep.subr.bf16.mxu0 %v4016_v46 }
  0x9b   : > { %1006 = vmatpush1.bf16.msra.mxu1 %v4015_v45 }
  0x9c   : > { %1007 = vmatprep.subr.bf16.mxu1 %v4019_v49  ;;  %965 = vmatpush1.bf16.msra.mxu0 %v4018_v48 }
  0x9d   : > { %966 = vmatprep.subr.bf16.mxu0 %v4022_v51 }
  0x9f   : > { %1008 = vmatpush1.bf16.msra.mxu1 %v4021_v52  ;;  %v446_v52 = vsub.s32 3, %v4603_v35 }
  0xa0   : > { %1009 = vmatprep.subr.bf16.mxu1 %v4025_v53  ;;  %967 = vmatpush1.bf16.msra.mxu0 %v4024_v54  ;;  %v438_v54 = vsub.s32 1, %v4603_v35 }
  0xa1   : > { %968 = vmatprep.subr.bf16.mxu0 %v4028_v55 }
  0xa3   : > { %1010 = vmatpush1.bf16.msra.mxu1 %v4027_v56  ;;  %v447_v56 = vrot.slane %v4609_v39, %v446_v52 }
  0xa4   : > { %1011 = vmatprep.subr.bf16.mxu1 %v4031_v57  ;;  %969 = vmatpush1.bf16.msra.mxu0 %v4030_v58  ;;  %v439_v57 = vrot.slane %v4609_v39, %v438_v54 }
  0xa5   : > { %970 = vmatprep.subr.bf16.mxu0 %v4034_v59 }
  0xa7   : > { %1012 = vmatpush1.bf16.msra.mxu1 %v4033_v60 }
  0xa8   : > { %1013 = vmatprep.subr.bf16.mxu1 %v4037_v61  ;;  %971 = vmatpush1.bf16.msra.mxu0 %v4036_v62  ;;  %v4355_v61 = vmov 0.0   ;;  %v4357_v62 = vmov 1983009808  }
  0xa9   : > { %972 = vmatprep.subr.bf16.mxu0 %v4040_v63  ;;  %v1090_v63 = vunpack.c.l.s4 %v4357_v62 }
  0xab   : > { %1014 = vmatpush1.bf16.msra.mxu1 %v4039_v0 }
  0xac   : > { %973 = vmatpush1.bf16.msra.mxu0 %v4042_v2  ;;  %3756 = vmatprep.subr.bf16.mxu1 %v4355_v61  ;;  %v1091_v2 = vunpack.c.0.s8 %v1090_v63 }
  0xad   : > { %1024 = vmatprep.subr.bf16.mxu0 %v4045_v5 }
  0xae   : > { %1016 = vmatmul.mubr.bf16.vlgmr.msra.gmra.mrb[0].mxu1 %v4599_v3 }
  0xaf   : > { %975 = vmatmul.mubr.bf16.vlgmr.msra.gmra.mrb[0].mxu0 %v4599_v3  ;;  %3758 = vmatprep.mubr.msk.bf16.mxu1 %vm4356_vm0, %v4355_v61 }
  0xb0   : > { %1056 = vmatprep.mubr.bf16.mxu0 %v333_v50  ;;  %1025 = vmatpush1.bf16.msra.mxu0 %v4043_v4 }
  0xb1   : > { %1026 = vmatprep.subr.bf16.mxu0 %v4048_v6 }
  0xb4   : > { %1027 = vmatpush1.bf16.msra.mxu0 %v4046_v7 }
  0xb5   : > { %1028 = vmatprep.subr.bf16.mxu0 %v4051_v8 }
  0xb8   : > { %1029 = vmatpush1.bf16.msra.mxu0 %v4049_v9  ;;  %v4652_v9 = vsub.s32 %v1091_v2, %v4603_v35 }
  0xb9   : > { %1030 = vmatprep.subr.bf16.mxu0 %v4054_v10 }
  0xbc   : > { %1031 = vmatpush1.bf16.msra.mxu0 %v4052_v11 }
  0xbd   : > { %1032 = vmatprep.subr.bf16.mxu0 %v4057_v12 }
  0xc0   : > { %1033 = vmatpush1.bf16.msra.mxu0 %v4055_v13 }
  0xc1   : > { %1034 = vmatprep.subr.bf16.mxu0 %v4060_v14 }
  0xc4   : > { %1035 = vmatpush1.bf16.msra.mxu0 %v4058_v15 }
  0xc5   : > { %1036 = vmatprep.subr.bf16.mxu0 %v4063_v16 }
  0xc8   : > { %1037 = vmatpush1.bf16.msra.mxu0 %v4061_v17 }
  0xc9   : > { %1038 = vmatprep.subr.bf16.mxu0 %v4066_v18 }
  0xcc   : > { %1039 = vmatpush1.bf16.msra.mxu0 %v4064_v19 }
  0xcd   : > { %1040 = vmatprep.subr.bf16.mxu0 %v4069_v20 }
  0xd0   : > { %1041 = vmatpush1.bf16.msra.mxu0 %v4067_v21 }
  0xd1   : > { %1042 = vmatprep.subr.bf16.mxu0 %v4072_v22 }
  0xd4   : > { %1043 = vmatpush1.bf16.msra.mxu0 %v4070_v23 }
  0xd5   : > { %1044 = vmatprep.subr.bf16.mxu0 %v4075_v24 }
  0xd8   : > { %1045 = vmatpush1.bf16.msra.mxu0 %v4073_v25 }
  0xd9   : > { %1046 = vmatprep.subr.bf16.mxu0 %v4078_v26 }
  0xdc   : > { %1047 = vmatpush1.bf16.msra.mxu0 %v4076_v27 }
  0xdd   : > { %1048 = vmatprep.subr.bf16.mxu0 %v4081_v28 }
  0xe0   : > { %1049 = vmatpush1.bf16.msra.mxu0 %v4079_v29 }
  0xe1   : > { %1050 = vmatprep.subr.bf16.mxu0 %v4084_v30 }
  0xe4   : > { %1051 = vmatpush1.bf16.msra.mxu0 %v4082_v31 }
  0xe5   : > { %1052 = vmatprep.subr.bf16.mxu0 %v4087_v32 }
  0xe8   : > { %1053 = vmatpush1.bf16.msra.mxu0 %v4085_v33 }
  0xe9   : > { %1054 = vmatprep.subr.bf16.mxu0 %v4090_v36 }
  0xec   : > { %1055 = vmatpush1.bf16.msra.mxu0 %v4088_v37 }
  0xed   : > { %3804 = vmatprep.subr.bf16.mxu0 %v4355_v61 }
  0xef   : > { %1057 = vmatmul.mubr.bf16.vlgmr.msra.gmra.mrb[4].mxu0 %v4599_v3  ;;  %v4358_v3 = vmov 1934713408  }
  0xf0   : > { %3806 = vmatprep.mubr.msk.bf16.mxu0 %vm4356_vm0, %v4355_v61  ;;  %v1154_v4 = vunpack.c.l.s4 %v4358_v3 }
  0xf2   : > { %v1155_v10 = vunpack.c.0.s8 %v1154_v4 }
  0xf4   : > { %v4657_v21 = vsub.s32 %v1155_v10, %v4603_v35 }
 0x181   : > { %v1017_v43 = vpop.f32.mrb[0].mxu1 }
 0x182   : > { %v1018_v44 = vadd.f32 %v1017_v43, %v443_v41  ;;  %v1019_v45 = vpop.f32.mrb[1].mxu1  ;;  %v976_v46 = vpop.f32.mrb[0].mxu0 }
 0x183   : > { %v1021_v47 = vpop.f32.mrb[2].mxu1  ;;  %v977_v48 = vadd.f32 %v976_v46, %v435_v42  ;;  %v978_v50 = vpop.f32.mrb[1].mxu0  ;;  %v4629_v58 = vadd.f32 %v1019_v45, %v447_v56 }
 0x184   : > { %v1022_v49 = vpop.f32.mrb[3].mxu1  ;;  %1366 = vrot.lane.b32.xlu1 %v1018_v44, %s4352_s9  ;;  %1360 = vrot.lane.b32.xlu0 %v1018_v44, %s4353_s8  ;;  %v980_v51 = vpop.f32.mrb[2].mxu0  ;;  %v979_v59 = vadd.f32 %v978_v50, %v439_v57 }
 0x185   : > { %v1065_v53 = vmul.f32 0.17677669, %v977_v48  ;;  %v981_v55 = vpop.f32.mrb[3].mxu0 }
 0x186   : > { %v4635_v60 = vmul.f32 0.17677669, %v979_v59 }
 0x188   : > { %1363 = vrot.lane.b32.xlu0 %v1018_v44, %s4354_s10  ;;  %1068 = vrot.lane.b32.xlu1 %v1065_v53, %s4353_s8 }
 0x18c   : > { %1071 = vrot.lane.b32.xlu0 %v1065_v53, %s4354_s10  ;;  %1074 = vrot.lane.b32.xlu1 %v1065_v53, %s4352_s9 }
 0x190   : > { %1370 = vrot.lane.b32.xlu0 %v4629_v58, %s4353_s8  ;;  %1373 = vrot.lane.b32.xlu1 %v4629_v58, %s4354_s10 }
 0x194   : > { %1376 = vrot.lane.b32.xlu0 %v4629_v58, %s4352_s9  ;;  %1078 = vrot.lane.b32.xlu1 %v4635_v60, %s4353_s8 }
 0x198   : > { %1081 = vrot.lane.b32.xlu0 %v4635_v60, %s4354_s10  ;;  %1084 = vrot.lane.b32.xlu1 %v4635_v60, %s4352_s9 }
 0x1f6   : > { %v1367_v0 = vpop.permute.xlu1 %1366  ;;  %v1361_v1 = vpop.permute.xlu0 %1360 }
 0x1f7   : > { %v1395_v11 = vcombine.low %v1361_v1, %v1367_v0  ;;  %v1396_v12 = vcombine.high %v1361_v1, %v1367_v0 }
 0x1f9   : > { %v1403_v22 = vrot.slane %v1395_v11, %v4652_v9  ;;  %v1410_v23 = vrot.slane %v1396_v12, %v4652_v9 }
 0x1fa   : > { %v1364_v5 = vpop.permute.xlu0 %1363  ;;  %v1069_v6 = vpop.permute.xlu1 %1068 }
 0x1fb   : > { %v1379_v7 = vcombine.low %v1018_v44, %v1364_v5  ;;  %v1380_v8 = vcombine.high %v1018_v44, %v1364_v5 }
 0x1fd   : > { %v1387_v15 = vrot.slane %v1379_v7, %v4652_v9  ;;  %v1394_v16 = vrot.slane %v1380_v8, %v4652_v9 }
 0x1fe   : > { %v1072_v13 = vpop.permute.xlu0 %1071  ;;  %v1075_v14 = vpop.permute.xlu1 %1074 }
 0x1ff   : > { %v1087_v17 = vcombine.low %v1065_v53, %v1072_v13  ;;  %v1088_v18 = vcombine.high %v1065_v53, %v1072_v13  ;;  %v1103_v19 = vcombine.low %v1069_v6, %v1075_v14  ;;  %v1104_v20 = vcombine.high %v1069_v6, %v1075_v14 }
 0x200   : > { %v1443_v28 = vcombine.low %v1387_v15, %v1403_v22  ;;  %v1444_v29 = vcombine.high %v1387_v15, %v1403_v22  ;;  %v1459_v30 = vcombine.low %v1394_v16, %v1410_v23  ;;  %v1460_v31 = vcombine.high %v1394_v16, %v1410_v23 }
 0x201   : > { %v1095_v24 = vrot.slane %v1087_v17, %v4652_v9  ;;  %v1102_v25 = vrot.slane %v1088_v18, %v4652_v9  ;;  %v1111_v26 = vrot.slane %v1103_v19, %v4652_v9  ;;  %v1118_v27 = vrot.slane %v1104_v20, %v4652_v9 }
 0x202   : > { %v1451_v37 = vrot.slane %v1443_v28, %v4657_v21  ;;  %v1458_v38 = vrot.slane %v1444_v29, %v4657_v21  ;;  %v1467_v41 = vrot.slane %v1459_v30, %v4657_v21  ;;  %v1474_v42 = vrot.slane %v1460_v31, %v4657_v21  ;;  %v1371_v47 = vpop.permute.xlu0 %1370  ;;  %v1374_v57 = vpop.permute.xlu1 %1373 }
 0x203   : > { %v1151_v32 = vcombine.low %v1095_v24, %v1111_v26  ;;  %v1152_v33 = vcombine.high %v1095_v24, %v1111_v26  ;;  %v1167_v34 = vcombine.low %v1102_v25, %v1118_v27  ;;  %v1168_v36 = vcombine.high %v1102_v25, %v1118_v27 }
 0x204   : > { %v3644_v48 = vcombine.low %v1451_v37, %v1458_v38  ;;  %v3646_v49 = vcombine.high %v1451_v37, %v1458_v38  ;;  %v3648_v50 = vcombine.low %v1467_v41, %v1474_v42  ;;  %v3650_v51 = vcombine.high %v1467_v41, %v1474_v42 }
 0x205   : > { %v1159_v43 = vrot.slane %v1151_v32, %v4657_v21  ;;  %v1166_v44 = vrot.slane %v1152_v33, %v4657_v21  ;;  %v1175_v45 = vrot.slane %v1167_v34, %v4657_v21  ;;  %v1182_v46 = vrot.slane %v1168_v36, %v4657_v21 }
 0x206   : > { %v1523_v59 = vrot.slane %v3644_v48, %v4652_v9  ;;  %v1539_v62 = vrot.slane %v3646_v49, %v4652_v9  ;;  %v1555_v63 = vrot.slane %v3648_v50, %v4652_v9  ;;  %v1571_v0 = vrot.slane %v3650_v51, %v4652_v9  ;;  %v1377_v1 = vpop.permute.xlu0 %1376  ;;  %v1079_v8 = vpop.permute.xlu1 %1078 }
 0x207   : > { %v3636_v52 = vcombine.low %v1159_v43, %v1166_v44  ;;  %v3638_v53 = vcombine.high %v1159_v43, %v1166_v44  ;;  %v3640_v55 = vcombine.low %v1175_v45, %v1182_v46  ;;  %v3642_v56 = vcombine.high %v1175_v45, %v1182_v46 }
 0x208   : > { %v1427_v6 = vcombine.low %v1371_v47, %v1377_v1  ;;  %v1428_v7 = vcombine.high %v1371_v47, %v1377_v1  ;;  %v1579_v10 = vcombine.low %v1523_v59, %v1539_v62  ;;  %v1611_v11 = vcombine.low %v1555_v63, %v1571_v0 }
 0x209   : > { %v4678_v2 = vrot.slane %v3636_v52, %v4652_v9  ;;  %v4681_v3 = vrot.slane %v3638_v53, %v4652_v9  ;;  %v4684_v4 = vrot.slane %v3640_v55, %v4652_v9  ;;  %v4687_v5 = vrot.slane %v3642_v56, %v4652_v9 }
 0x20a   : > { %v1411_v12 = vcombine.low %v4629_v58, %v1374_v57  ;;  %v1412_v13 = vcombine.high %v4629_v58, %v1374_v57  ;;  %v1587_v16 = vrot.slane %v1579_v10, %v4657_v21  ;;  %v1619_v17 = vrot.slane %v1611_v11, %v4657_v21  ;;  %v1082_v58 = vpop.permute.xlu0 %1081  ;;  %v1085_v24 = vpop.permute.xlu1 %1084 }
 0x20b   : > { %v1287_v14 = vcombine.low %v4678_v2, %v4681_v3  ;;  %v1319_v15 = vcombine.low %v4684_v4, %v4687_v5  ;;  %v1435_v18 = vrot.slane %v1427_v6, %v4652_v9  ;;  %v1442_v19 = vrot.slane %v1428_v7, %v4652_v9 }
 0x20c   : > { %v1643_v20 = vcombine.low %v1587_v16, %v1619_v17  ;;  %v1419_v22 = vrot.slane %v1411_v12, %v4652_v9  ;;  %v1426_v23 = vrot.slane %v1412_v13, %v4652_v9  ;;  %v1644_v33 = vcombine.high %v1587_v16, %v1619_v17 }
 0x20d   : > { %v1295_v26 = vrot.slane %v1287_v14, %v4657_v21  ;;  %v1327_v27 = vrot.slane %v1319_v15, %v4657_v21  ;;  %v1580_v34 = vcombine.high %v1523_v59, %v1539_v62  ;;  %v1612_v36 = vcombine.high %v1555_v63, %v1571_v0 }
 0x20e   : > { %v1951_v25 = vpack.c.bf16 %v1643_v20, %v1643_v20  ;;  %v1475_v28 = vcombine.low %v1419_v22, %v1435_v18  ;;  %v1476_v29 = vcombine.high %v1419_v22, %v1435_v18  ;;  %v1491_v30 = vcombine.low %v1426_v23, %v1442_v19 }
 0x20f   : > { %v1492_v31 = vcombine.high %v1426_v23, %v1442_v19  ;;  %v1119_v37 = vcombine.low %v4635_v60, %v1082_v58  ;;  %v1120_v38 = vcombine.high %v4635_v60, %v1082_v58  ;;  %v1135_v41 = vcombine.low %v1079_v8, %v1085_v24 }
 0x210   : > { %v1964_v32 = vsel %vm1959_vm1, %v1951_v25, 0  ;;  %v1136_v42 = vcombine.high %v1079_v8, %v1085_v24  ;;  %v1351_v43 = vcombine.low %v1295_v26, %v1327_v27  ;;  %v1483_v44 = vrot.slane %v1475_v28, %v4657_v21 }
 0x211   : > { %3757 = vmatpush3.bf16.xpose.msra.mxu1 %v1964_v32  ;;  %v1490_v45 = vrot.slane %v1476_v29, %v4657_v21  ;;  %v1499_v46 = vrot.slane %v1491_v30, %v4657_v21  ;;  %v1506_v47 = vrot.slane %v1492_v31, %v4657_v21  ;;  %v1952_v48 = vpack.c.bf16 %v1644_v33, %v1644_v33 }
 0x212   : > { %3762 = vmatprep.subr.bf16.mxu1 %v4355_v61  ;;  %v1594_v49 = vrot.slane %v1580_v34, %v4657_v21  ;;  %v1626_v50 = vrot.slane %v1612_v36, %v4657_v21  ;;  %v1127_v60 = vrot.slane %v1119_v37, %v4652_v9  ;;  %v1134_v51 = vrot.slane %v1120_v38, %v4652_v9 }
 0x213   : > { %v1143_v52 = vrot.slane %v1135_v41, %v4652_v9  ;;  %v1150_v53 = vrot.slane %v1136_v42, %v4652_v9  ;;  %v1943_v55 = vpack.c.bf16 %v1351_v43, %v1351_v43  ;;  %v3645_v56 = vcombine.low %v1483_v44, %v1490_v45 }
 0x214   : > { %v3647_v57 = vcombine.high %v1483_v44, %v1490_v45  ;;  %v3649_v59 = vcombine.low %v1499_v46, %v1506_v47  ;;  %v3651_v62 = vcombine.high %v1499_v46, %v1506_v47  ;;  %v2010_v63 = vsel %vm1959_vm1, %v1952_v48, 0 }
 0x215   : > { %v1645_v0 = vcombine.low %v1594_v49, %v1626_v50  ;;  %v1183_v1 = vcombine.low %v1127_v60, %v1143_v52  ;;  %v1184_v6 = vcombine.high %v1127_v60, %v1143_v52  ;;  %v1199_v7 = vcombine.low %v1134_v51, %v1150_v53 }
 0x216   : > { %v1288_v8 = vcombine.high %v4678_v2, %v4681_v3  ;;  %v1320_v10 = vcombine.high %v4684_v4, %v4687_v5  ;;  %v1200_v11 = vcombine.high %v1134_v51, %v1150_v53  ;;  %v1352_v12 = vcombine.high %v1295_v26, %v1327_v27 }
 0x217   : > { %v1530_v13 = vrot.slane %v3645_v56, %v4652_v9  ;;  %v1546_v14 = vrot.slane %v3647_v57, %v4652_v9  ;;  %v1562_v15 = vrot.slane %v3649_v59, %v4652_v9  ;;  %v1578_v16 = vrot.slane %v3651_v62, %v4652_v9 }
 0x218   : > { %3759 = vmatmul.mubr.msk.bf16.vlgmr.msra.gmra.mrb[4].mxu1 %vm1959_vm1, %v1943_v55  ;;  %v1953_v17 = vpack.c.bf16 %v1645_v0, %v1645_v0  ;;  %v1191_v18 = vrot.slane %v1183_v1, %v4657_v21  ;;  %v1198_v2 = vrot.slane %v1184_v6, %v4657_v21  ;;  %v1207_v3 = vrot.slane %v1199_v7, %v4657_v21 }
 0x219   : > { %3763 = vmatpush3.bf16.xpose.msra.mxu1 %v2010_v63  ;;  %3764 = vmatprep.mubr.msk.bf16.mxu1 %vm4356_vm0, %v4355_v61  ;;  %v1214_v4 = vrot.slane %v1200_v11, %v4657_v21  ;;  %v1944_v5 = vpack.c.bf16 %v1352_v12, %v1352_v12  ;;  %v1302_v19 = vrot.slane %v1288_v8, %v4657_v21  ;;  %v450_v8 = vsub.s32 4, %v4603_v35 }
 0x21a   : > { %3768 = vmatprep.subr.bf16.mxu1 %v4355_v61  ;;  %v1334_v20 = vrot.slane %v1320_v10, %v4657_v21  ;;  %v2056_v22 = vsel %vm1959_vm1, %v1953_v17, 0  ;;  %v1646_v23 = vcombine.high %v1594_v49, %v1626_v50  ;;  %v1595_v58 = vcombine.low %v1530_v13, %v1546_v14 }
 0x21b   : > { %v1627_v24 = vcombine.low %v1562_v15, %v1578_v16  ;;  %v3637_v25 = vcombine.low %v1191_v18, %v1198_v2  ;;  %v3639_v26 = vcombine.high %v1191_v18, %v1198_v2  ;;  %v3641_v27 = vcombine.low %v1207_v3, %v1214_v4  ;;  %v1058_v18 = vpop.f32.mrb[4].mxu0 }
 0x21c   : > { %v3643_v28 = vcombine.high %v1207_v3, %v1214_v4  ;;  %v1353_v29 = vcombine.low %v1302_v19, %v1334_v20  ;;  %v1954_v30 = vpack.c.bf16 %v1646_v23, %v1646_v23  ;;  %v1603_v31 = vrot.slane %v1595_v58, %v4657_v21  ;;  %v3668_v58 = vld [vmem:[%s328_s30] ss:$0 sm:$0xff] }
 0x21d   : > { %v1635_v32 = vrot.slane %v1627_v24, %v4657_v21  ;;  %v1238_v33 = vrot.slane %v3637_v25, %v4652_v9  ;;  %v1254_v34 = vrot.slane %v3639_v26, %v4652_v9  ;;  %v1270_v36 = vrot.slane %v3641_v27, %v4652_v9 }
 0x21e   : > { %v1286_v37 = vrot.slane %v3643_v28, %v4652_v9  ;;  %v1945_v38 = vpack.c.bf16 %v1353_v29, %v1353_v29  ;;  %v2102_v41 = vsel %vm1959_vm1, %v1954_v30, 0  ;;  %v1354_v45 = vcombine.high %v1302_v19, %v1334_v20  ;;  %v4787_v20 = vpop.f32.mrb[5].mxu0 }
 0x21f   : > { %v1647_v42 = vcombine.low %v1603_v31, %v1635_v32  ;;  %v1303_v43 = vcombine.low %v1238_v33, %v1254_v34  ;;  %v1648_v60 = vcombine.high %v1603_v31, %v1635_v32  ;;  %v1596_v51 = vcombine.high %v1530_v13, %v1546_v14 }
 0x220   : > { %3765 = vmatmul.mubr.msk.bf16.vlgmr.msra.gmra.mrb[8].mxu1 %vm1959_vm1, %v1944_v5  ;;  %v1335_v44 = vcombine.low %v1270_v36, %v1286_v37  ;;  %v1946_v47 = vpack.c.bf16 %v1354_v45, %v1354_v45  ;;  %v1628_v52 = vcombine.high %v1562_v15, %v1578_v16  ;;  %v1304_v0 = vcombine.high %v1238_v33, %v1254_v34 }
 0x221   : > { %3769 = vmatpush3.bf16.xpose.msra.mxu1 %v2056_v22  ;;  %3770 = vmatprep.mubr.msk.bf16.mxu1 %vm4356_vm0, %v4355_v61  ;;  %v1955_v46 = vpack.c.bf16 %v1647_v42, %v1647_v42  ;;  %v1311_v48 = vrot.slane %v1303_v43, %v4657_v21  ;;  %v1956_v55 = vpack.c.bf16 %v1648_v60, %v1648_v60  ;;  %v1062_v22 = vpop.f32.mrb[6].mxu0 }
 0x222   : > { %3774 = vmatprep.subr.bf16.mxu1 %v4355_v61  ;;  %v1343_v49 = vrot.slane %v1335_v44, %v4657_v21  ;;  %v1610_v56 = vrot.slane %v1596_v51, %v4657_v21  ;;  %v1642_v57 = vrot.slane %v1628_v52, %v4657_v21  ;;  %v1336_v1 = vcombine.high %v1270_v36, %v1286_v37  ;;  %v1063_v23 = vpop.f32.mrb[7].mxu0 }
 0x223   : > { %v2148_v50 = vsel %vm1959_vm1, %v1955_v46, 0  ;;  %v2194_v62 = vsel %vm1959_vm1, %v1956_v55, 0  ;;  %v1318_v11 = vrot.slane %v1304_v0, %v4657_v21  ;;  %v451_v15 = vrot.slane %v4609_v39, %v450_v8 }
 0x224   : > { %v1355_v53 = vcombine.low %v1311_v48, %v1343_v49  ;;  %v1649_v63 = vcombine.low %v1610_v56, %v1642_v57  ;;  %v1356_v6 = vcombine.high %v1311_v48, %v1343_v49  ;;  %v1350_v12 = vrot.slane %v1336_v1, %v4657_v21 }
 0x225   : > { %v1650_v14 = vcombine.high %v1610_v56, %v1642_v57  ;;  %v4775_v2 = vadd.f32 %v1058_v18, %v451_v15 }
 0x226   : > { %v1947_v59 = vpack.c.bf16 %v1355_v53, %v1355_v53  ;;  %v1957_v7 = vpack.c.bf16 %v1649_v63, %v1649_v63  ;;  %v1948_v10 = vpack.c.bf16 %v1356_v6, %v1356_v6  ;;  %v1357_v16 = vcombine.low %v1318_v11, %v1350_v12 }
 0x227   : > { %v1958_v17 = vpack.c.bf16 %v1650_v14, %v1650_v14  ;;  %1652 = vrot.lane.b32.xlu1 %v4775_v2, %s4353_s8  ;;  %v1358_v5 = vcombine.high %v1318_v11, %v1350_v12 }
 0x228   : > { %3771 = vmatmul.mubr.msk.bf16.vlgmr.msra.gmra.mrb[12].mxu1 %vm1959_vm1, %v1945_v38  ;;  %v2240_v13 = vsel %vm1959_vm1, %v1957_v7, 0  ;;  %v1949_v3 = vpack.c.bf16 %v1357_v16, %v1357_v16 }
 0x229   : > { %3775 = vmatpush3.bf16.xpose.msra.mxu1 %v2102_v41  ;;  %3776 = vmatprep.mubr.msk.bf16.mxu1 %vm4356_vm0, %v4355_v61  ;;  %v2286_v4 = vsel %vm1959_vm1, %v1958_v17, 0  ;;  %v1950_v19 = vpack.c.bf16 %v1358_v5, %v1358_v5 }
 0x22a   : > { %3780 = vmatprep.subr.bf16.mxu1 %v4355_v61 }
 0x230   : > { %3777 = vmatmul.mubr.msk.bf16.vlgmr.msra.gmra.mrb[16].mxu1 %vm1959_vm1, %v1946_v47 }
 0x231   : > { %3781 = vmatpush3.bf16.xpose.msra.mxu1 %v2148_v50  ;;  %3782 = vmatprep.mubr.msk.bf16.mxu1 %vm4356_vm0, %v4355_v61 }
 0x232   : > { %3786 = vmatprep.subr.bf16.mxu1 %v4355_v61 }
 0x238   : > { %3783 = vmatmul.mubr.msk.bf16.vlgmr.msra.gmra.mrb[20].mxu1 %vm1959_vm1, %v1947_v59 }
 0x239   : > { %3787 = vmatpush3.bf16.xpose.msra.mxu1 %v2194_v62  ;;  %3788 = vmatprep.mubr.msk.bf16.mxu1 %vm4356_vm0, %v4355_v61 }
 0x23a   : > { %3792 = vmatprep.subr.bf16.mxu1 %v4355_v61 }
 0x240   : > { %3789 = vmatmul.mubr.msk.bf16.vlgmr.msra.gmra.mrb[24].mxu1 %vm1959_vm1, %v1948_v10 }
 0x241   : > { %3793 = vmatpush3.bf16.xpose.msra.mxu1 %v2240_v13  ;;  %3794 = vmatprep.mubr.msk.bf16.mxu1 %vm4356_vm0, %v4355_v61 }
 0x242   : > { %3798 = vmatprep.subr.bf16.mxu1 %v4355_v61 }
 0x248   : > { %3795 = vmatmul.mubr.msk.bf16.vlgmr.msra.gmra.mrb[28].mxu1 %vm1959_vm1, %v1949_v3 }
 0x249   : > { %3799 = vmatpush3.bf16.xpose.msra.mxu1 %v2286_v4  ;;  %3800 = vmatprep.mubr.msk.bf16.mxu1 %vm4356_vm0, %v4355_v61 }
 0x24a   : > { %3810 = vmatprep.subr.bf16.mxu1 %v4355_v61 }
 0x250   : > { %3801 = vmatmul.mubr.msk.bf16.vlgmr.msra.gmra.mrb[32].mxu1 %vm1959_vm1, %v1950_v19 }
 0x251   : > { %3812 = vmatprep.mubr.msk.bf16.mxu1 %vm4356_vm0, %v4355_v61 }
 0x299   : > { %v1653_v19 = vpop.permute.xlu1 %1652 }
 0x2eb   : > { %v2000_v24 = vpop.f32.mrb[4].mxu1 }
 0x2ec   : > { %v2335_v25 = vadd.f32 %v3668_v58, %v2000_v24  ;;  %v3760_v26 = vpop.f32.mrb[5].mxu1 }
 0x2ed   : > { %v2003_v27 = vpop.f32.mrb[6].mxu1 }
 0x2ee   : > { %v3761_v28 = vpop.f32.mrb[7].mxu1  ;;  %v2344_v29 = vsel %vm2343_vm2, %v2335_v25, -inf }
 0x2ef   : > { %2345 = vmax.xlane.f32.xlu0 %v2344_v29 }
 0x2f3   : > { %v2046_v30 = vpop.f32.mrb[8].mxu1 }
 0x2f4   : > { %v2336_v31 = vadd.f32 %v3668_v58, %v2046_v30  ;;  %v3766_v32 = vpop.f32.mrb[9].mxu1 }
 0x2f5   : > { %v2049_v33 = vpop.f32.mrb[10].mxu1 }
 0x2f6   : > { %v3767_v34 = vpop.f32.mrb[11].mxu1  ;;  %v2347_v36 = vsel %vm2343_vm2, %v2336_v31, -inf }
 0x2f7   : > { %2348 = vmax.xlane.f32.xlu1 %v2347_v36 }
 0x2fb   : > { %v2092_v37 = vpop.f32.mrb[12].mxu1 }
 0x2fc   : > { %v2337_v38 = vadd.f32 %v3668_v58, %v2092_v37  ;;  %v3772_v41 = vpop.f32.mrb[13].mxu1 }
 0x2fd   : > { %v2095_v42 = vpop.f32.mrb[14].mxu1 }
 0x2fe   : > { %v3773_v43 = vpop.f32.mrb[15].mxu1  ;;  %v2350_v44 = vsel %vm2343_vm2, %v2337_v38, -inf }
 0x2ff   : > { %2351 = vmax.xlane.f32.xlu0 %v2350_v44  ;;  %v454_v43 = vsub.s32 5, %v4603_v35 }
 0x303   : > { %v2138_v45 = vpop.f32.mrb[16].mxu1 }
 0x304   : > { %v2338_v46 = vadd.f32 %v3668_v58, %v2138_v45  ;;  %v3778_v47 = vpop.f32.mrb[17].mxu1  ;;  %v455_v45 = vrot.slane %v4609_v39, %v454_v43 }
 0x305   : > { %v2141_v48 = vpop.f32.mrb[18].mxu1 }
 0x306   : > { %v3779_v49 = vpop.f32.mrb[19].mxu1  ;;  %v2353_v50 = vsel %vm2343_vm2, %v2338_v46, -inf  ;;  %v4836_v47 = vadd.f32 %v4787_v20, %v455_v45 }
 0x307   : > { %2354 = vmax.xlane.f32.xlu0 %v2353_v50 }
 0x30b   : > { %v2184_v60 = vpop.f32.mrb[20].mxu1 }
 0x30c   : > { %v2339_v51 = vadd.f32 %v3668_v58, %v2184_v60  ;;  %v3784_v52 = vpop.f32.mrb[21].mxu1 }
 0x30d   : > { %v2187_v53 = vpop.f32.mrb[22].mxu1 }
 0x30e   : > { %v3785_v55 = vpop.f32.mrb[23].mxu1  ;;  %v2356_v56 = vsel %vm2343_vm2, %v2339_v51, -inf }
 0x30f   : > { %2357 = vmax.xlane.f32.xlu1 %v2356_v56 }
 0x313   : > { %v2230_v57 = vpop.f32.mrb[24].mxu1 }
 0x314   : > { %v4799_v59 = vadd.f32 %v3668_v58, %v2230_v57  ;;  %v3790_v62 = vpop.f32.mrb[25].mxu1 }
 0x315   : > { %v2233_v63 = vpop.f32.mrb[26].mxu1 }
 0x316   : > { %v3791_v0 = vpop.f32.mrb[27].mxu1  ;;  %v2359_v1 = vsel %vm2343_vm2, %v4799_v59, -inf }
 0x317   : > { %2360 = vmax.xlane.f32.xlu0 %v2359_v1 }
 0x31b   : > { %v2276_v6 = vpop.f32.mrb[28].mxu1 }
 0x31c   : > { %v4803_v7 = vadd.f32 %v3668_v58, %v2276_v6  ;;  %v3796_v8 = vpop.f32.mrb[29].mxu1 }
 0x31d   : > { %v2279_v10 = vpop.f32.mrb[30].mxu1 }
 0x31e   : > { %v3797_v11 = vpop.f32.mrb[31].mxu1  ;;  %v2362_v12 = vsel %vm2343_vm2, %v4803_v7, -inf }
 0x31f   : > { %2363 = vmax.xlane.f32.xlu1 %v2362_v12 }
 0x323   : > { %v2322_v13 = vpop.f32.mrb[32].mxu1 }
 0x324   : > { %v4807_v14 = vadd.f32 %v3668_v58, %v2322_v13  ;;  %v3802_v15 = vpop.f32.mrb[33].mxu1 }
 0x325   : > { %v2325_v16 = vpop.f32.mrb[34].mxu1 }
 0x326   : > { %v3803_v17 = vpop.f32.mrb[35].mxu1  ;;  %v2365_v18 = vsel %vm2343_vm2, %v4807_v14, -inf }
 0x327   : > { %2366 = vmax.xlane.f32.xlu0 %v2365_v18 }
 0x330   : > { %1658 = vrot.lane.b32.xlu1 %v4775_v2, %s4352_s9 }
 0x33d   : > { %1655 = vrot.lane.b32.xlu0 %v4775_v2, %s4354_s10 }
 0x37c   : > { %v2346_v3 = vpop.xlane.xlu0 %2345 }
 0x37d   : > { %v2368_v4 = vsub.f32 %v2335_v25, %v2346_v3 }
 0x37f   : > { %v2376_v5 = vmul.f32 1.442695, %v2368_v4 }
 0x381   : > { %4139 = vpow2.f32 %v2376_v5 }
 0x384   : > { %v2349_v22 = vpop.xlane.xlu1 %2348 }
 0x385   : > { %v2369_v23 = vsub.f32 %v2336_v31, %v2349_v22 }
 0x387   : > { %v2378_v58 = vmul.f32 1.442695, %v2369_v23 }
 0x389   : > { %4141 = vpow2.f32 %v2378_v58 }
 0x38b   : > { %v4815_v24 = vpop.eup %4139 }
 0x38c   : > { %v2352_v26 = vpop.xlane.xlu0 %2351  ;;  %v2392_v27 = vsel %vm2343_vm2, %v4815_v24, 0.0 }
 0x38d   : > { %v2370_v28 = vsub.f32 %v2337_v38, %v2352_v26  ;;  %2393 = vadd.xlane.f32.xlu1 %v2392_v27 }
 0x38f   : > { %v2380_v29 = vmul.f32 1.442695, %v2370_v28 }
 0x391   : > { %4143 = vpow2.f32 %v2380_v29 }
 0x393   : > { %v4819_v30 = vpop.eup %4141 }
 0x394   : > { %v2355_v25 = vpop.xlane.xlu0 %2354  ;;  %v2395_v32 = vsel %vm2343_vm2, %v4819_v30, 0.0 }
 0x395   : > { %v2371_v33 = vsub.f32 %v2338_v46, %v2355_v25  ;;  %2396 = vadd.xlane.f32.xlu0 %v2395_v32 }
 0x397   : > { %v2382_v31 = vmul.f32 1.442695, %v2371_v33 }
 0x399   : > { %4145 = vpow2.f32 %v2382_v31 }
 0x39b   : > { %v4823_v34 = vpop.eup %4143 }
 0x39c   : > { %v2358_v36 = vpop.xlane.xlu1 %2357  ;;  %v2398_v37 = vsel %vm2343_vm2, %v4823_v34, 0.0 }
 0x39d   : > { %v2372_v38 = vsub.f32 %v2339_v51, %v2358_v36  ;;  %2399 = vadd.xlane.f32.xlu1 %v2398_v37 }
 0x39f   : > { %v2384_v41 = vmul.f32 1.442695, %v2372_v38 }
 0x3a1   : > { %4147 = vpow2.f32 %v2384_v41 }
 0x3a3   : > { %v4827_v42 = vpop.eup %4145 }
 0x3a4   : > { %v2401_v44 = vsel %vm2343_vm2, %v4827_v42, 0.0  ;;  %v2361_v50 = vpop.xlane.xlu0 %2360 }
 0x3a5   : > { %2402 = vadd.xlane.f32.xlu0 %v2401_v44  ;;  %v2373_v0 = vsub.f32 %v4799_v59, %v2361_v50 }
 0x3a7   : > { %v2386_v15 = vmul.f32 1.442695, %v2373_v0 }
 0x3a9   : > { %4149 = vpow2.f32 %v2386_v15 }
 0x3ab   : > { %v4833_v46 = vpop.eup %4147 }
 0x3ac   : > { %v2404_v48 = vsel %vm2343_vm2, %v4833_v46, 0.0  ;;  %v2364_v49 = vpop.xlane.xlu1 %2363 }
 0x3ad   : > { %2405 = vadd.xlane.f32.xlu0 %v2404_v48  ;;  %v2374_v41 = vsub.f32 %v4803_v7, %v2364_v49 }
 0x3ae   : > { %1665 = vrot.lane.b32.xlu1 %v4836_v47, %s4354_s10  ;;  %s4360_s10 = smov [#allocation8]  }
 0x3af   : > { %v2388_v48 = vmul.f32 1.442695, %v2374_v41  ;;  %s4261_s13 = sshll.u32 %s4360_s10, 4  ;;  %s4262_s13 = int_to_ptr.vmem [resolvable:$false] %s4261_s13 }
 0x3b0   : > { %v1659_v60 = vpop.permute.xlu1 %1658  ;;  %s4263_s15 = scalar_lea.vmem %s4262_s13, 512  ;;  %p4264_p5 = scmp.lt.s32.totalorder %s4970_s29, %s4262_s13 }
 0x3b1   : > { %v1687_v52 = vcombine.low %v1653_v19, %v1659_v60  ;;  %v1688_v53 = vcombine.high %v1653_v19, %v1659_v60  ;;  %4151 = vpow2.f32 %v2388_v48  ;;  %p4265_p9 = scmp.lt.s32.totalorder %s4263_s15, %s4257_s20 }
 0x3b3   : > { %v1695_v20 = vrot.slane %v1687_v52, %v4652_v9  ;;  %v1702_v57 = vrot.slane %v1688_v53, %v4652_v9  ;;  %v4866_v45 = vpop.eup %4149  ;;  %p4266_p11 = por %p4265_p9, %p4264_p5 }
 0x3b4   : > { %v2367_v51 = vpop.xlane.xlu0 %2366  ;;  %v2407_v50 = vsel %vm2343_vm2, %v4866_v45, 0.0 }
 0x3b5   : > { %v2375_v49 = vsub.f32 %v4807_v14, %v2367_v51  ;;  %p4267_p0 = pnand %p4266_p11, %p4260_p3 }
 0x3b7   : > { %v2390_v52 = vmul.f32 1.442695, %v2375_v49 }
 0x3b8   : > { %v1656_v55 = vpop.permute.xlu0 %1655 }
 0x3b9   : > { %v1671_v39 = vcombine.low %v4775_v2, %v1656_v55  ;;  %v1672_v56 = vcombine.high %v4775_v2, %v1656_v55  ;;  %4153 = vpow2.f32 %v2390_v52 }
 0x3bb   : > { %v1679_v62 = vrot.slane %v1671_v39, %v4652_v9  ;;  %v1686_v63 = vrot.slane %v1672_v56, %v4652_v9  ;;  %v4872_v60 = vpop.eup %4151 }
 0x3bc   : > { %v2410_v7 = vsel %vm2343_vm2, %v4872_v60, 0.0 }
 0x3bd   : > { %v1735_v1 = vcombine.low %v1679_v62, %v1695_v20  ;;  %v1736_v6 = vcombine.high %v1679_v62, %v1695_v20  ;;  %v1751_v8 = vcombine.low %v1686_v63, %v1702_v57  ;;  %v1752_v10 = vcombine.high %v1686_v63, %v1702_v57 }
 0x3bf   : > { %v1743_v11 = vrot.slane %v1735_v1, %v4657_v21  ;;  %v1750_v12 = vrot.slane %v1736_v6, %v4657_v21  ;;  %v1759_v2 = vrot.slane %v1751_v8, %v4657_v21  ;;  %v1766_v13 = vrot.slane %v1752_v10, %v4657_v21 }
 0x3c1   : > { %v3652_v16 = vcombine.low %v1743_v11, %v1750_v12  ;;  %v3654_v17 = vcombine.high %v1743_v11, %v1750_v12  ;;  %v3656_v18 = vcombine.low %v1759_v2, %v1766_v13  ;;  %v3658_v3 = vcombine.high %v1759_v2, %v1766_v13 }
 0x3c3   : > { %v1815_v4 = vrot.slane %v3652_v16, %v4652_v9  ;;  %v1831_v59 = vrot.slane %v3654_v17, %v4652_v9  ;;  %v1847_v5 = vrot.slane %v3656_v18, %v4652_v9  ;;  %v1863_v19 = vrot.slane %v3658_v3, %v4652_v9  ;;  %1662 = vrot.lane.b32.xlu0 %v4836_v47, %s4353_s8  ;;  %v4879_v53 = vpop.eup %4153  ;;  %s4968_s8 = scalar_lea.hbm %s5023_s6, %s3723_s28 }
 0x3c4   : > { %v2413_v55 = vsel %vm2343_vm2, %v4879_v53, 0.0 }
 0x3c5   : > { %v1871_v22 = vcombine.low %v1815_v4, %v1831_v59  ;;  %v1903_v23 = vcombine.low %v1847_v5, %v1863_v19  ;;  %v1872_v58 = vcombine.high %v1815_v4, %v1831_v59  ;;  %v1904_v26 = vcombine.high %v1847_v5, %v1863_v19 }
 0x3c7   : > { %v1879_v27 = vrot.slane %v1871_v22, %v4657_v21  ;;  %v1911_v28 = vrot.slane %v1903_v23, %v4657_v21  ;;  %v1886_v29 = vrot.slane %v1872_v58, %v4657_v21  ;;  %v1918_v25 = vrot.slane %v1904_v26, %v4657_v21 }
 0x3c9   : > { %v1935_v32 = vcombine.low %v1879_v27, %v1911_v28  ;;  %v1936_v33 = vcombine.high %v1879_v27, %v1911_v28  ;;  %v1937_v31 = vcombine.low %v1886_v29, %v1918_v25  ;;  %v1938_v36 = vcombine.high %v1886_v29, %v1918_v25 }
 0x3cb   : > { %v2440_v37 = vpack.c.bf16 %v1935_v32, %v1935_v32  ;;  %v2441_v38 = vpack.c.bf16 %v1936_v33, %v1936_v33  ;;  %v2442_v62 = vpack.c.bf16 %v1937_v31, %v1937_v31  ;;  %v2443_v6 = vpack.c.bf16 %v1938_v36, %v1938_v36 }
 0x3cd   : > { %v2453_v43 = vsel %vm2451_vm3, %v2440_v37, 0  ;;  %v2499_v44 = vsel %vm2451_vm3, %v2441_v38, 0  ;;  %v2545_v14 = vsel %vm2451_vm3, %v2442_v62, 0  ;;  %v2591_v10 = vsel %vm2451_vm3, %v2443_v6, 0 }
 0x3ce   : > { %3805 = vmatpush3.bf16.msra.mxu0 %v2453_v43  ;;  %3811 = vmatpush3.bf16.msra.mxu1 %v2499_v44 }
 0x3cf   : > { %3816 = vmatprep.subr.bf16.mxu0 %v4355_v61  ;;  %3822 = vmatprep.subr.bf16.mxu1 %v4355_v61 }
 0x3d2   : > { %2408 = vadd.xlane.f32.xlu1 %v2407_v50 }
 0x3e2   : > { %2411 = vadd.xlane.f32.xlu0 %v2410_v7 }
 0x3e3   : > { %1668 = vrot.lane.b32.xlu1 %v4836_v47, %s4352_s9 }
 0x407   : > { %2414 = vadd.xlane.f32.xlu1 %v2413_v55 }
 0x41a   : > { %v2394_v39 = vpop.xlane.xlu1 %2393 }
 0x41b   : > { %4155 = vrcp.f32 %v2394_v39 }
 0x422   : > { %v2397_v56 = vpop.xlane.xlu0 %2396 }
 0x423   : > { %4157 = vrcp.f32 %v2397_v56 }
 0x425   : > { %v4156_v20 = vpop.eup %4155 }
 0x426   : > { %v2424_v57 = vmul.f32 %v4156_v20, %v4815_v24 }
 0x428   : > { %v2432_v63 = vpack.c.bf16 %v2424_v57, %v2424_v57 }
 0x42a   : > { %3807 = vmatmul.mubr.msk.bf16.vlgmr.msra.gmra.mrb[8].mxu0 %vm2343_vm2, %v2432_v63  ;;  %v2400_v51 = vpop.xlane.xlu1 %2399 }
 0x42b   : > { %3817 = vmatpush3.bf16.msra.mxu0 %v2545_v14  ;;  %4159 = vrcp.f32 %v2400_v51  ;;  %3818 = vmatprep.mubr.msk.bf16.mxu0 %vm4356_vm0, %v4355_v61 }
 0x42c   : > { %3828 = vmatprep.subr.bf16.mxu0 %v4355_v61 }
 0x42d   : > { %v4158_v0 = vpop.eup %4157 }
 0x42e   : > { %v2425_v1 = vmul.f32 %v4158_v0, %v4819_v30  ;;  %v1666_v16 = vpop.permute.xlu1 %1665 }
 0x42f   : > { %v1704_v3 = vcombine.high %v4836_v47, %v1666_v16 }
 0x430   : > { %v2433_v8 = vpack.c.bf16 %v2425_v1, %v2425_v1 }
 0x432   : > { %v2403_v24 = vpop.xlane.xlu0 %2402  ;;  %3813 = vmatmul.mubr.msk.bf16.vlgmr.msra.gmra.mrb[36].mxu1 %vm2343_vm2, %v2433_v8 }
 0x433   : > { %4161 = vrcp.f32 %v2403_v24  ;;  %3823 = vmatpush3.bf16.msra.mxu1 %v2591_v10  ;;  %3824 = vmatprep.mubr.msk.bf16.mxu1 %vm4356_vm0, %v4355_v61 }
 0x434   : > { %3834 = vmatprep.subr.bf16.mxu1 %v4355_v61 }
 0x435   : > { %v4160_v11 = vpop.eup %4159 }
 0x436   : > { %v2426_v12 = vmul.f32 %v4160_v11, %v4823_v34  ;;  %v1703_v34 = vcombine.low %v4836_v47, %v1666_v16 }
 0x438   : > { %v2434_v2 = vpack.c.bf16 %v2426_v12, %v2426_v12  ;;  %v1711_v22 = vrot.slane %v1703_v34, %v4652_v9 }
 0x43a   : > { %3819 = vmatmul.mubr.msk.bf16.vlgmr.msra.gmra.mrb[12].mxu0 %vm2343_vm2, %v2434_v2  ;;  %v2406_v17 = vpop.xlane.xlu0 %2405 }
 0x43b   : > { %3830 = vmatprep.mubr.msk.bf16.mxu0 %vm4356_vm0, %v4355_v61  ;;  %4163 = vrcp.f32 %v2406_v17  ;;  %v4099_v17 = vld [vmem:[#allocation7 + $0x24] ss:$8 sps:$4 sm:$0xff]  }
 0x43d   : > { %v4162_v30 = vpop.eup %4161 }
 0x43e   : > { %v2427_v13 = vmul.f32 %v4162_v30, %v4827_v42  ;;  %v1663_v4 = vpop.permute.xlu0 %1662  ;;  %v1718_v42 = vrot.slane %v1704_v3, %v4652_v9  ;;  %v4102_v3 = vld [vmem:[#allocation7 + $0x34] ss:$8 sps:$4 sm:$0xff]  }
 0x440   : > { %v2435_v15 = vpack.c.bf16 %v2427_v13, %v2427_v13 }
 0x442   : > { %3825 = vmatmul.mubr.msk.bf16.vlgmr.msra.gmra.mrb[40].mxu1 %vm2343_vm2, %v2435_v15 }
 0x443   : > { %3836 = vmatprep.mubr.msk.bf16.mxu1 %vm4356_vm0, %v4355_v61 }
 0x445   : > { %v4164_v55 = vpop.eup %4163 }
 0x446   : > { %v2428_v1 = vmul.f32 %v4164_v55, %v4833_v46  ;;  %v4093_v46 = vld [vmem:[#allocation7 + $0x4] ss:$8 sps:$4 sm:$0xff]  }
 0x448   : > { %v2436_v30 = vpack.c.bf16 %v2428_v1, %v2428_v1  ;;  %v4126_v1 = vld [vmem:[#allocation7 + $0xb4] ss:$8 sps:$4 sm:$0xff]  }
 0x45f   : > { %v2409_v18 = vpop.xlane.xlu1 %2408 }
 0x460   : > { %4165 = vrcp.f32 %v2409_v18  ;;  %v4097_v18 = vld [vmem:[#allocation7 + $0x20] ss:$8 sps:$4 sm:$0xff]  }
 0x463   : > { %v1669_v59 = vpop.permute.xlu1 %1668 }
 0x464   : > { %v1719_v5 = vcombine.low %v1663_v4, %v1669_v59  ;;  %v1720_v19 = vcombine.high %v1663_v4, %v1669_v59  ;;  %v4100_v4 = vld [vmem:[#allocation7 + $0x30] ss:$8 sps:$4 sm:$0xff]   ;;  %v4359_v59 = vmov 0  }
 0x466   : > { %v1727_v23 = vrot.slane %v1719_v5, %v4652_v9  ;;  %v1734_v58 = vrot.slane %v1720_v19, %v4652_v9 }
 0x468   : > { %v1767_v26 = vcombine.low %v1711_v22, %v1727_v23  ;;  %v1768_v27 = vcombine.high %v1711_v22, %v1727_v23  ;;  %v1783_v28 = vcombine.low %v1718_v42, %v1734_v58  ;;  %v1784_v29 = vcombine.high %v1718_v42, %v1734_v58  ;;  %v4091_v22 = vld [vmem:[#allocation7] ss:$8 sps:$4 sm:$0xff]   ;;  %v4096_v23 = vld [vmem:[#allocation7 + $0x14] ss:$8 sps:$4 sm:$0xff]   ;;  %v4094_v58 = vld [vmem:[#allocation7 + $0x10] ss:$8 sps:$4 sm:$0xff]  }
 0x46a   : > { %v1775_v47 = vrot.slane %v1767_v26, %v4657_v21  ;;  %v1782_v25 = vrot.slane %v1768_v27, %v4657_v21  ;;  %v1791_v32 = vrot.slane %v1783_v28, %v4657_v21  ;;  %v1798_v33 = vrot.slane %v1784_v29, %v4657_v21  ;;  %v4166_v62 = vpop.eup %4165  ;;  %v4111_v26 = vld [vmem:[#allocation7 + $0x64] ss:$8 sps:$4 sm:$0xff]   ;;  %v4109_v28 = vld [vmem:[#allocation7 + $0x60] ss:$8 sps:$4 sm:$0xff]  }
 0x46b   : > { %v2429_v6 = vmul.f32 %v4166_v62, %v4866_v45  ;;  %v4121_v62 = vld [vmem:[#allocation7 + $0x90] ss:$8 sps:$4 sm:$0xff]  }
 0x46c   : > { %v3653_v31 = vcombine.low %v1775_v47, %v1782_v25  ;;  %v3655_v36 = vcombine.high %v1775_v47, %v1782_v25  ;;  %v3657_v37 = vcombine.low %v1791_v32, %v1798_v33  ;;  %v3659_v38 = vcombine.high %v1791_v32, %v1798_v33  ;;  %v4114_v25 = vld [vmem:[#allocation7 + $0x74] ss:$8 sps:$4 sm:$0xff]   ;;  %v4112_v33 = vld [vmem:[#allocation7 + $0x70] ss:$8 sps:$4 sm:$0xff]  }
 0x46e   : > { %v1822_v41 = vrot.slane %v3653_v31, %v4652_v9  ;;  %v1838_v43 = vrot.slane %v3655_v36, %v4652_v9  ;;  %v1854_v44 = vrot.slane %v3657_v37, %v4652_v9  ;;  %v1870_v48 = vrot.slane %v3659_v38, %v4652_v9  ;;  %v4120_v31 = vld [vmem:[#allocation7 + $0xa4] ss:$8 sps:$4 sm:$0xff]   ;;  %v4103_v37 = vld [vmem:[#allocation7 + $0x40] ss:$8 sps:$4 sm:$0xff]  }
 0x46f   : > { %v2412_v50 = vpop.xlane.xlu0 %2411 }
 0x470   : > { %v1887_v7 = vcombine.low %v1822_v41, %v1838_v43  ;;  %v1919_v49 = vcombine.low %v1854_v44, %v1870_v48  ;;  %v1888_v52 = vcombine.high %v1822_v41, %v1838_v43  ;;  %4167 = vrcp.f32 %v2412_v50  ;;  %v4108_v43 = vld [vmem:[#allocation7 + $0x54] ss:$8 sps:$4 sm:$0xff]   ;;  %v4106_v50 = vld [vmem:[#allocation7 + $0x50] ss:$8 sps:$4 sm:$0xff]  }
 0x471   : > { %v1920_v39 = vcombine.high %v1854_v44, %v1870_v48 }
 0x472   : > { %v1895_v56 = vrot.slane %v1887_v7, %v4657_v21  ;;  %v1927_v20 = vrot.slane %v1919_v49, %v4657_v21  ;;  %v1902_v57 = vrot.slane %v1888_v52, %v4657_v21  ;;  %v4117_v7 = vld [vmem:[#allocation7 + $0x84] ss:$8 sps:$4 sm:$0xff]   ;;  %v4115_v52 = vld [vmem:[#allocation7 + $0x80] ss:$8 sps:$4 sm:$0xff]  }
 0x473   : > { %v1934_v63 = vrot.slane %v1920_v39, %v4657_v21  ;;  %v2437_v21 = vpack.c.bf16 %v2429_v6, %v2429_v6 }
 0x474   : > { %v1939_v14 = vcombine.low %v1895_v56, %v1927_v20  ;;  %v1940_v51 = vcombine.high %v1895_v56, %v1927_v20  ;;  %v4123_v56 = vld [vmem:[#allocation7 + $0x94] ss:$8 sps:$4 sm:$0xff]  }
 0x475   : > { %v1941_v0 = vcombine.low %v1902_v57, %v1934_v63  ;;  %v1942_v9 = vcombine.high %v1902_v57, %v1934_v63  ;;  %v4129_v63 = vld [vmem:[#allocation7 + $0xc4] ss:$8 sps:$4 sm:$0xff]  }
 0x476   : > { %v2444_v8 = vpack.c.bf16 %v1939_v14, %v1939_v14  ;;  %v2445_v24 = vpack.c.bf16 %v1940_v51, %v1940_v51  ;;  %v4118_v51 = vld [vmem:[#allocation7 + $0xa0] ss:$8 sps:$4 sm:$0xff]  }
 0x477   : > { %v2446_v12 = vpack.c.bf16 %v1941_v0, %v1941_v0  ;;  %v2447_v2 = vpack.c.bf16 %v1942_v9, %v1942_v9 }
 0x478   : > { %v2637_v10 = vsel %vm2451_vm3, %v2444_v8, 0  ;;  %v2683_v11 = vsel %vm2451_vm3, %v2445_v24, 0  ;;  %v4124_v24 = vld [vmem:[#allocation7 + $0xb0] ss:$8 sps:$4 sm:$0xff]  }
 0x479   : > { %3829 = vmatpush3.bf16.msra.mxu0 %v2637_v10  ;;  %3835 = vmatpush3.bf16.msra.mxu1 %v2683_v11  ;;  %v2729_v45 = vsel %vm2451_vm3, %v2446_v12, 0  ;;  %v2775_v15 = vsel %vm2451_vm3, %v2447_v2, 0  ;;  %v4135_v10 = vld [vmem:[#allocation7 + $0xe4] ss:$8 sps:$4 sm:$0xff]   ;;  %v4127_v2 = vld [vmem:[#allocation7 + $0xc0] ss:$8 sps:$4 sm:$0xff]  }
 0x47a   : > { %3840 = vmatprep.subr.bf16.mxu0 %v4355_v61  ;;  %3846 = vmatprep.subr.bf16.mxu1 %v4355_v61  ;;  %v4168_v13 = vpop.eup %4167 }
 0x47b   : > { %v2430_v16 = vmul.f32 %v4168_v13, %v4872_v60  ;;  %v4105_v60 = vld [vmem:[#allocation7 + $0x44] ss:$8 sps:$4 sm:$0xff]  }
 0x47c   : > { %3831 = vmatmul.mubr.msk.bf16.vlgmr.msra.gmra.mrb[16].mxu0 %vm2343_vm2, %v2436_v30  ;;  %3837 = vmatmul.mubr.msk.bf16.vlgmr.msra.gmra.mrb[44].mxu1 %vm2343_vm2, %v2437_v21 }
 0x47d   : > { %3841 = vmatpush3.bf16.msra.mxu0 %v2729_v45  ;;  %3847 = vmatpush3.bf16.msra.mxu1 %v2775_v15  ;;  %v2438_v34 = vpack.c.bf16 %v2430_v16, %v2430_v16  ;;  %v4132_v45 = vld [vmem:[#allocation7 + $0xd4] ss:$8 sps:$4 sm:$0xff]   ;;  %v4133_v15 = vld [vmem:[#allocation7 + $0xe0] ss:$8 sps:$4 sm:$0xff]  }
 0x47e   : > { %3842 = vmatprep.mubr.msk.bf16.mxu0 %vm4356_vm0, %v4355_v61  ;;  %3848 = vmatprep.mubr.msk.bf16.mxu1 %vm4356_vm0, %v4355_v61 }
 0x47f   : > { %2914 = vmatprep.subr.bf16.mxu1 %v4093_v46  ;;  %2850 = vmatprep.subr.bf16.mxu0 %v4099_v17 }
 0x484   : > { %3843 = vmatmul.mubr.msk.bf16.vlgmr.msra.gmra.mrb[20].mxu0 %vm2343_vm2, %v2438_v34 }
 0x485   : > { %2851 = vmatpush1.bf16.msra.mxu0 %v4097_v18  ;;  %2882 = vmatprep.mubr.bf16.mxu0 %v4359_v59  ;;  %v4138_v18 = vld [vmem:[#allocation7 + $0xf4] ss:$8 sps:$4 sm:$0xff]  }
 0x486   : > { %2852 = vmatprep.subr.bf16.mxu0 %v4102_v3 }
 0x489   : > { %2853 = vmatpush1.bf16.msra.mxu0 %v4100_v4  ;;  %v4130_v4 = vld [vmem:[#allocation7 + $0xd0] ss:$8 sps:$4 sm:$0xff]  }
 0x48a   : > { %2983 = vmatprep.subr.bf16.mxu0 %v4105_v60  ;;  %v4136_v60 = vld [vmem:[#allocation7 + $0xf0] ss:$8 sps:$4 sm:$0xff]  }
 0x494   : > { %v2415_v5 = vpop.xlane.xlu1 %2414 }
 0x495   : > { %4169 = vrcp.f32 %v2415_v5 }
 0x49f   : > { %v4170_v61 = vpop.eup %4169 }
 0x4a0   : > { %v2431_v19 = vmul.f32 %v4170_v61, %v4879_v53 }
 0x4a2   : > { %v2439_v42 = vpack.c.bf16 %v2431_v19, %v2431_v19 }
 0x4a4   : > { %3849 = vmatmul.mubr.msk.bf16.vlgmr.msra.gmra.mrb[48].mxu1 %vm2343_vm2, %v2439_v42 }
 0x4a5   : > { %2915 = vmatpush1.bf16.msra.mxu1 %v4091_v22  ;;  %2946 = vmatprep.mubr.bf16.mxu1 %v4359_v59 }
 0x4a6   : > { %2916 = vmatprep.subr.bf16.mxu1 %v4096_v23 }
 0x4a9   : > { %2917 = vmatpush1.bf16.msra.mxu1 %v4094_v58 }
 0x4aa   : > { %3054 = vmatprep.subr.bf16.mxu1 %v4111_v26 }
 0x4fd   : > { %v2489_v27 = vpop.f32.mrb[8].mxu0 }
 0x4fe   : > { %v2817_v29 = vpack.c.bf16 %v2489_v27, %v2489_v27  ;;  %v3808_v47 = vpop.f32.mrb[9].mxu0 }
 0x4ff   : > { %v2492_v32 = vpop.f32.mrb[10].mxu0 }
 0x500   : > { %v3809_v53 = vpop.f32.mrb[11].mxu0  ;;  %3686 = vmatmul.mubr.msk.bf16.vlgmr.msra.gmra.mrb[52].mxu1 %vm1959_vm1, %v2817_v29 }
 0x501   : > { %3055 = vmatpush1.bf16.msra.mxu1 %v4109_v28  ;;  %3086 = vmatprep.mubr.bf16.mxu1 %v4359_v59 }
 0x502   : > { %3056 = vmatprep.subr.bf16.mxu1 %v4114_v25 }
 0x505   : > { %v2535_v36 = vpop.f32.mrb[36].mxu1  ;;  %3057 = vmatpush1.bf16.msra.mxu1 %v4112_v33 }
 0x506   : > { %v2822_v38 = vpack.c.bf16 %v2535_v36, %v2535_v36  ;;  %v3814_v41 = vpop.f32.mrb[37].mxu1  ;;  %3196 = vmatprep.subr.bf16.mxu1 %v4120_v31 }
 0x507   : > { %v2538_v44 = vpop.f32.mrb[38].mxu1 }
 0x508   : > { %v3815_v48 = vpop.f32.mrb[39].mxu1  ;;  %3681 = vmatmul.mubr.msk.bf16.vlgmr.msra.gmra.mrb[24].mxu0 %vm1959_vm1, %v2822_v38 }
 0x509   : > { %2984 = vmatpush1.bf16.msra.mxu0 %v4103_v37  ;;  %3015 = vmatprep.mubr.bf16.mxu0 %v4359_v59 }
 0x50a   : > { %2985 = vmatprep.subr.bf16.mxu0 %v4108_v43 }
 0x50d   : > { %v2581_v49 = vpop.f32.mrb[12].mxu0  ;;  %2986 = vmatpush1.bf16.msra.mxu0 %v4106_v50 }
 0x50e   : > { %v2955_v55 = vpack.c.bf16 %v2581_v49, %v2581_v49  ;;  %v3820_v39 = vpop.f32.mrb[13].mxu0  ;;  %3125 = vmatprep.subr.bf16.mxu0 %v4117_v7 }
 0x50f   : > { %v2584_v20 = vpop.f32.mrb[14].mxu0 }
 0x510   : > { %v3821_v57 = vpop.f32.mrb[15].mxu0  ;;  %3691 = vmatmul.mubr.msk.bf16.vlgmr.msra.gmra.mrb[28].mxu0 %vm1959_vm1, %v2955_v55 }
 0x511   : > { %3126 = vmatpush1.bf16.msra.mxu0 %v4115_v52  ;;  %3157 = vmatprep.mubr.bf16.mxu0 %v4359_v59 }
 0x512   : > { %3127 = vmatprep.subr.bf16.mxu0 %v4123_v56 }
 0x515   : > { %v2627_v14 = vpop.f32.mrb[40].mxu1  ;;  %3128 = vmatpush1.bf16.msra.mxu0 %v4121_v62 }
 0x516   : > { %v3026_v0 = vpack.c.bf16 %v2627_v14, %v2627_v14  ;;  %v3826_v9 = vpop.f32.mrb[41].mxu1  ;;  %3267 = vmatprep.subr.bf16.mxu0 %v4129_v63 }
 0x517   : > { %v2630_v6 = vpop.f32.mrb[42].mxu1 }
 0x518   : > { %v3827_v8 = vpop.f32.mrb[43].mxu1  ;;  %3696 = vmatmul.mubr.msk.bf16.vlgmr.msra.gmra.mrb[56].mxu1 %vm1959_vm1, %v3026_v0 }
 0x519   : > { %3197 = vmatpush1.bf16.msra.mxu1 %v4118_v51  ;;  %3228 = vmatprep.mubr.bf16.mxu1 %v4359_v59 }
 0x51a   : > { %3198 = vmatprep.subr.bf16.mxu1 %v4126_v1 }
 0x51d   : > { %3199 = vmatpush1.bf16.msra.mxu1 %v4124_v24 }
 0x51e   : > { %3338 = vmatprep.subr.bf16.mxu1 %v4135_v10 }
 0x54f   : > { %v2673_v11 = vpop.f32.mrb[16].mxu0  ;;  %v2719_v12 = vpop.f32.mrb[44].mxu1 }
 0x550   : > { %v3097_v30 = vpack.c.bf16 %v2673_v11, %v2673_v11  ;;  %v3168_v21 = vpack.c.bf16 %v2719_v12, %v2719_v12  ;;  %v3832_v13 = vpop.f32.mrb[17].mxu0  ;;  %v3838_v46 = vpop.f32.mrb[45].mxu1 }
 0x551   : > { %v2676_v16 = vpop.f32.mrb[18].mxu0  ;;  %v2722_v17 = vpop.f32.mrb[46].mxu1  ;;  %v3381_v13 = vld [vmem:[%s5022_s5] sm:$0x3] }
 0x552   : > { %v3833_v34 = vpop.f32.mrb[19].mxu0  ;;  %v3839_v3 = vpop.f32.mrb[47].mxu1  ;;  %3701 = vmatmul.mubr.msk.bf16.vlgmr.msra.gmra.mrb[32].mxu0 %vm1959_vm1, %v3097_v30  ;;  %3706 = vmatmul.mubr.msk.bf16.vlgmr.msra.gmra.mrb[60].mxu1 %vm1959_vm1, %v3168_v21  ;;  %v3386_v46 = vrot.slane %v3381_v13, %v434_v40 }
 0x553   : > { %3268 = vmatpush1.bf16.msra.mxu0 %v4127_v2  ;;  %3299 = vmatprep.mubr.bf16.mxu0 %v4359_v59 }
 0x554   : > { %3269 = vmatprep.subr.bf16.mxu0 %v4132_v45  ;;  %3339 = vmatpush1.bf16.msra.mxu1 %v4133_v15  ;;  %v3390_v15 = vrot.slane %v3381_v13, %v438_v54 }
 0x555   : > { %3340 = vmatprep.subr.bf16.mxu1 %v4138_v18  ;;  %3370 = vmatprep.mubr.bf16.mxu1 %v4359_v59 }
 0x557   : > { %v2765_v5 = vpop.f32.mrb[20].mxu0  ;;  %3270 = vmatpush1.bf16.msra.mxu0 %v4130_v4 }
 0x558   : > { %v3239_v61 = vpack.c.bf16 %v2765_v5, %v2765_v5  ;;  %v3844_v19 = vpop.f32.mrb[21].mxu0  ;;  %3341 = vmatpush1.bf16.msra.mxu1 %v4136_v60 }
 0x559   : > { %v2768_v22 = vpop.f32.mrb[22].mxu0 }
 0x55a   : > { %v3845_v42 = vpop.f32.mrb[23].mxu0  ;;  %3711 = vmatmul.mubr.msk.bf16.vlgmr.msra.gmra.mrb[36].mxu0 %vm1959_vm1, %v3239_v61 }
 0x577   : > { %v2811_v23 = vpop.f32.mrb[48].mxu1 }
 0x578   : > { %v3310_v58 = vpack.c.bf16 %v2811_v23, %v2811_v23  ;;  %v3850_v26 = vpop.f32.mrb[49].mxu1 }
 0x579   : > { %v2814_v27 = vpop.f32.mrb[50].mxu1 }
 0x57a   : > { %v3851_v28 = vpop.f32.mrb[51].mxu1  ;;  %3716 = vmatmul.mubr.msk.bf16.vlgmr.msra.gmra.mrb[64].mxu1 %vm1959_vm1, %v3310_v58 }
 0x5d3   : > { %v2948_v29 = vpop.f32.mrb[52].mxu1 }
 0x5d4   : > { %v2950_v47 = vpop.f32.mrb[53].mxu1 }
 0x5d5   : > { %v2952_v25 = vpop.f32.mrb[54].mxu1 }
 0x5d6   : > { %v2953_v59 = vpop.f32.mrb[55].mxu1 }
 0x5db   : > { %v2884_v32 = vpop.f32.mrb[24].mxu0 }
 0x5dc   : > { %v2949_v53 = vadd.f32 %v2948_v29, %v2884_v32  ;;  %v2886_v33 = vpop.f32.mrb[25].mxu0 }
 0x5dd   : > { %v2951_v31 = vadd.f32 %v2950_v47, %v2886_v33  ;;  %v2888_v36 = vpop.f32.mrb[26].mxu0 }
 0x5de   : > { %v2889_v37 = vpop.f32.mrb[27].mxu0 }
 0x5e3   : > { %v3017_v38 = vpop.f32.mrb[28].mxu0 }
 0x5e4   : > { %v3024_v41 = vadd.f32 %v3017_v38, %v2949_v53  ;;  %v3019_v43 = vpop.f32.mrb[29].mxu0 }
 0x5e5   : > { %v3025_v44 = vadd.f32 %v3019_v43, %v2951_v31  ;;  %v3021_v48 = vpop.f32.mrb[30].mxu0 }
 0x5e6   : > { %v3022_v50 = vpop.f32.mrb[31].mxu0 }
 0x5eb   : > { %v3088_v7 = vpop.f32.mrb[56].mxu1 }
 0x5ec   : > { %v3095_v49 = vadd.f32 %v3088_v7, %v3024_v41  ;;  %v3090_v52 = vpop.f32.mrb[57].mxu1 }
 0x5ed   : > { %v3096_v55 = vadd.f32 %v3090_v52, %v3025_v44  ;;  %v3092_v39 = vpop.f32.mrb[58].mxu1 }
 0x5ee   : > { %v3093_v56 = vpop.f32.mrb[59].mxu1 }
 0x625   : > { %v3159_v20 = vpop.f32.mrb[32].mxu0  ;;  %v3230_v57 = vpop.f32.mrb[60].mxu1 }
 0x626   : > { %v3166_v62 = vadd.f32 %v3159_v20, %v3095_v49  ;;  %v3161_v63 = vpop.f32.mrb[33].mxu0  ;;  %v3232_v14 = vpop.f32.mrb[61].mxu1 }
 0x627   : > { %v3167_v51 = vadd.f32 %v3161_v63, %v3096_v55  ;;  %v3163_v0 = vpop.f32.mrb[34].mxu0  ;;  %v3234_v9 = vpop.f32.mrb[62].mxu1 }
 0x628   : > { %v3237_v1 = vadd.f32 %v3230_v57, %v3166_v62  ;;  %v3164_v6 = vpop.f32.mrb[35].mxu0  ;;  %v3235_v8 = vpop.f32.mrb[63].mxu1 }
 0x629   : > { %v3238_v24 = vadd.f32 %v3232_v14, %v3167_v51 }
 0x62d   : > { %v3301_v10 = vpop.f32.mrb[36].mxu0 }
 0x62e   : > { %v3308_v11 = vadd.f32 %v3301_v10, %v3237_v1  ;;  %v3303_v12 = vpop.f32.mrb[37].mxu0 }
 0x62f   : > { %v3309_v2 = vadd.f32 %v3303_v12, %v3238_v24  ;;  %v3305_v30 = vpop.f32.mrb[38].mxu0 }
 0x630   : > { %v3306_v21 = vpop.f32.mrb[39].mxu0 }
 0x64d   : > { %v3372_v45 = vpop.f32.mrb[64].mxu1 }
 0x64e   : > { %v3379_v16 = vadd.f32 %v3372_v45, %v3308_v11  ;;  %v3374_v17 = vpop.f32.mrb[65].mxu1 }
 0x64f   : > { %v3380_v18 = vadd.f32 %v3374_v17, %v3309_v2  ;;  %v3376_v34 = vpop.f32.mrb[66].mxu1 }
 0x650   : > { %v3393_v3 = vadd.f32 %v3386_v46, %v3379_v16  ;;  %v3377_v4 = vpop.f32.mrb[67].mxu1 }
 0x651   : > { %v3394_v60 = vadd.f32 %v3390_v15, %v3380_v18 }
 0x652   : > { %3395 = vst [vmem:[%s325_s11] sm:$0xff] %v3393_v3 }
 0x653   : > { %3396 = vst [vmem:[%s325_s11 + $0x8] sm:$0xff] %v3394_v60 }
 0x654   : > { %4270 = shalt.err (!%p4267_p0)
}
 0x655   : > { %s4271_s17 = scalar_lea.hbm %s4968_s8, 256  ;;  %s4275_s12 = scalar_lea.hbm %s5023_s6, 512 }
 0x656   : > { %p4272_p4 = scmp.ne.s32.totalorder %s4968_s8, %s4271_s17  ;;  %p4276_p7 = scmp.lt.u32.totalorder %s4968_s8, %s5023_s6 }
 0x657   : > { %p4277_p2 = scmp.lt.u32.totalorder %s4275_s12, %s4271_s17  ;;  %p4279_p12 = scmp.lt.u32.totalorder %s4271_s17, %s4968_s8 }
 0x658   : > { %p4273_p13 = pnand %p4272_p4, %p5040_p1 }
 0x659   : > { %p4278_p8 = por %p4277_p2, %p4276_p7 }
 0x65a   : > { %p4274_p6 = pneg %p4273_p13 }
 0x65b   : > { %p4280_p10 = por %p4279_p12, %p4278_p8 }
 0x65d   : > { %p4281_p3 = pnand %p4280_p10, %p4274_p6 }
 0x65f   : > { %4284 = shalt.err (!%p4281_p3)
}
 0x660   : > { %3862 = dma.vmem_to_hbm [thread:$0]  (%p5040_p1), %s4970_s29, 256, %s4968_s8, %s3398_s24  }
 0x661 PF: > { %s5041_s11 = sld [smem:[#allocation12_spill]]  ;;  %s3426_s7 = sand.u32 1, %s4323_s21  }
 0x662   : > { %p5043_p9 = scmp.ge.s32.totalorder %s4343_s26, 2  ;;  %s3427_s9 = scalar_lea.sflag [#allocation4], %s3426_s7 }
 0x667   : > { %p5042_p5 = scmp.ne.s32.totalorder %s5041_s11, 0 }
 0x669   : > { %p3876_p11 = pnand %p5043_p9, %p5042_p5 }
 0x66b   : > { %4318 = dma.done.wait (!%p3876_p11), %s3427_s9, 256  }
 0x66c   : > { %4320 = vsyncadd (!%p3876_p11), %s3427_s9, 4294967040  ;;  %s23_s26 = sadd.s32 1, %s4343_s26   ;;  %s5044_s21 = smov %s4327_s22 }
 0x66d   : > { %p20_p0 = scmp.ge.s32.totalorder %s23_s26, 4   ;;  %s5045_s22 = smov %s4331_s23 }
 0x66e   : > { %s5046_s23 = smov %s4538_s27  ;;  %s5047_s24 = smov %s4339_s25 }
 0x66f   : > { %s5048_s25 = smov %s5050_s16  ;;  %22 = sbr.rel (!%p20_p0) target bundleno = 7 (0x7), region = 100 }
 0x676   :  { %3432 = vsyncpa [#allocation3], 1 }
 0x677   :  { %3434 = vsyncpa [#allocation3 + $0x1], 1 }
 0x678   :  { %3435 = vsyncpa [#allocation6], 1 }
 0x679   :  { %3436 = vsyncpa [#allocation4], 1 }
 0x67a   :  { %3438 = vsyncpa [#allocation4 + $0x1], 1 }

</bundles_post_ra>
